<compile_context>
chip_gen: v6e
topology: v6e:2x2x1
jax: 0.10.0
libtpu: 0.0.40
codegen_flags: <defaults>
</compile_context>

<pallas_src>
import functools

import jax
import jax.numpy as jnp
from jax.experimental import pallas as pl
from jax.experimental.pallas import tpu as pltpu


# ---------------------------------------------------------------------------
# Kernel 1: GRU recurrence over one (batch chunk, time chunk) grid cell.
# ---------------------------------------------------------------------------
def gru_chunk_kernel(x_ref, w_i_ref, b_i_ref, w_h_ref, b_hn_ref,
                     hs_ref, gx_ref, h_ref):
    """x_ref:   (Bc, Tc, E)    f32  input chunk (batch-major)
       w_i_ref: (E, 3Hp)       mm   fused input->gate weights   [r | z | n]
       b_i_ref: (1, 3Hp)       f32  fused biases [b_ir+b_hr | b_iz+b_hz | b_in]
       w_h_ref: (Hp, 3Hp)      mm   fused hidden->gate weights  [r | z | n]
       b_hn_ref:(1, Hp)        f32  hidden bias for the n gate
       hs_ref:  (Bc, Tc, Hp)   f32  output hidden states (batch-major)
       gx_ref:  (Bc, Tc, 3Hp)  f32  scratch: precomputed input-side gates
       h_ref:   (Bc, Hp)       f32  scratch: hidden-state carry across chunks
    """
    Bc, Tc, E = x_ref.shape
    Hp = h_ref.shape[-1]

    # Reset the hidden-state carry at the start of each batch block's sweep.
    @pl.when(pl.program_id(1) == 0)
    def _():
        h_ref[...] = jnp.zeros_like(h_ref)

    # Hoisted input-side gate projection for the whole chunk: one MXU matmul,
    # off the per-step critical path.  (Bc,Tc,E)->(Bc*Tc,E) is layout-free
    # because Tc is a multiple of 8 sublanes.
    x2d = x_ref[...].reshape(Bc * Tc, E)
    gx = jnp.dot(x2d.astype(w_i_ref.dtype), w_i_ref[...],
                 preferred_element_type=jnp.float32)
    gx_ref[...] = (gx + b_i_ref[...]).reshape(Bc, Tc, 3 * Hp)

    w_h = w_h_ref[...]
    b_hn = jnp.broadcast_to(b_hn_ref[...], (Bc, Hp))   # hoisted broadcast

    h = h_ref[...]
    # Static Python loop == full unroll; Tc is capped (<=32) so code size and
    # vreg live ranges stay bounded (partial-unroll territory only at huge Tc).
    for t in range(Tc):
        g = gx_ref[:, t]                                            # (Bc, 3Hp)
        gh = jnp.dot(h.astype(w_h.dtype), w_h,
                     preferred_element_type=jnp.float32)            # (Bc, 3Hp)
        r = jax.nn.sigmoid(g[:, :Hp] + gh[:, :Hp])
        z = jax.nn.sigmoid(g[:, Hp:2 * Hp] + gh[:, Hp:2 * Hp])
        n = jnp.tanh(g[:, 2 * Hp:] + r * (gh[:, 2 * Hp:] + b_hn))
        h = (1.0 - z) * n + z * h
        hs_ref[:, t] = h                                            # batch-major store
    h_ref[...] = h                                                  # carry to next chunk


# ---------------------------------------------------------------------------
# Kernel 2: output projection (tiled, pipelined, megacore-parallel).
# ---------------------------------------------------------------------------
def fc_kernel(hs_ref, w_ref, b_ref, out_ref):
    out_ref[...] = (jnp.dot(hs_ref[...], w_ref[...],
                            preferred_element_type=jnp.float32) + b_ref[...])


# ---------------------------------------------------------------------------
# Parameters / wrapper
# ---------------------------------------------------------------------------
def _round_up(x, m):
    return (x + m - 1) // m * m


def init_params(key, embed_size, hidden_size, vocab_size):
    E, H, V = embed_size, hidden_size, vocab_size
    ks = jax.random.split(key, 16)
    s = 1.0 / jnp.sqrt(jnp.float32(H))
    u = lambda k, shape: jax.random.uniform(k, shape, jnp.float32, -s, s)
    return {
        "embedding": jax.random.normal(ks[0], (V, E), jnp.float32),
        # input->gate (pre-transposed to (E, H)), PyTorch gate order [r, z, n]
        "w_ir": u(ks[1], (E, H)), "w_iz": u(ks[2], (E, H)), "w_in": u(ks[3], (E, H)),
        # hidden->gate (pre-transposed to (H, H))
        "w_hr": u(ks[4], (H, H)), "w_hz": u(ks[5], (H, H)), "w_hn": u(ks[6], (H, H)),
        "b_ir": u(ks[7], (1, H)), "b_iz": u(ks[8], (1, H)), "b_in": u(ks[9], (1, H)),
        "b_hr": u(ks[10], (1, H)), "b_hz": u(ks[11], (1, H)), "b_hn": u(ks[12], (1, H)),
        # fc (pre-transposed to (H, V))
        "w_fc": u(ks[13], (H, V)), "b_fc": u(ks[14], (1, V)),
    }


@functools.partial(jax.jit, static_argnames=("use_bf16",))
def decoder_rnn_forward(features, captions, params, use_bf16=False):
    """Matches DecoderRNN.forward: returns (B, T, V), T = captions.shape[1]."""
    # Glue: drop last token, embedding lookup, prepend image features.
    captions = captions[:, :-1]
    emb = jnp.take(params["embedding"], captions, axis=0)          # (B, T-1, E)
    x = jnp.concatenate([features[:, None, :], emb], axis=1)       # (B, T, E)
    x = x.astype(jnp.float32)

    B, T, E = x.shape
    H = params["w_hr"].shape[1]
    V = params["w_fc"].shape[1]

    mm_dtype = jnp.bfloat16 if use_bf16 else jnp.float32
    Hp = _round_up(H, 128)          # lane-dense hidden width
    Vp = _round_up(V, 128)          # lane-dense vocab width

    def pad_cols(w, target):
        return jnp.pad(w, ((0, 0), (0, target - w.shape[1])))

    # Fused, lane-padded GRU weights: blocks [r | z | n], each padded to Hp.
    w_i = jnp.concatenate([pad_cols(params["w_ir"], Hp),
                           pad_cols(params["w_iz"], Hp),
                           pad_cols(params["w_in"], Hp)], axis=1)   # (E, 3Hp)
    w_h = jnp.concatenate([pad_cols(params["w_hr"], Hp),
                           pad_cols(params["w_hz"], Hp),
                           pad_cols(params["w_hn"], Hp)], axis=1)
    w_h = jnp.pad(w_h, ((0, Hp - H), (0, 0)))                       # (Hp, 3Hp)
    # r/z biases pre-summed; b_in folded; b_hn kept separate (scaled by r).
    b_i = jnp.concatenate([pad_cols(params["b_ir"] + params["b_hr"], Hp),
                           pad_cols(params["b_iz"] + params["b_hz"], Hp),
                           pad_cols(params["b_in"], Hp)], axis=1)   # (1, 3Hp)
    b_hn = pad_cols(params["b_hn"], Hp)                              # (1, Hp)
    w_i = w_i.astype(mm_dtype)
    w_h = w_h.astype(mm_dtype)

    # Chunking: time chunks bound VMEM, batch chunks enable v7x megacore.
    Tc = min(_round_up(T, 8), 32)
    Tp = _round_up(T, Tc)
    Bc = min(B, 32)
    Bp = _round_up(B, Bc)
    x = jnp.pad(x, ((0, Bp - B), (0, Tp - T), (0, 0)))               # (Bp, Tp, E)

    hs = pl.pallas_call(
        gru_chunk_kernel,
        out_shape=jax.ShapeDtypeStruct((Bp, Tp, Hp), jnp.float32),
        grid=(Bp // Bc, Tp // Tc),
        in_specs=[
            pl.BlockSpec((Bc, Tc, E), lambda b, t: (b, t, 0)),
            pl.BlockSpec((E, 3 * Hp), lambda b, t: (0, 0)),          # resident
            pl.BlockSpec((1, 3 * Hp), lambda b, t: (0, 0)),          # resident
            pl.BlockSpec((Hp, 3 * Hp), lambda b, t: (0, 0)),         # resident
            pl.BlockSpec((1, Hp), lambda b, t: (0, 0)),              # resident
        ],
        out_specs=pl.BlockSpec((Bc, Tc, Hp), lambda b, t: (b, t, 0)),
        scratch_shapes=[pltpu.VMEM((Bc, Tc, 3 * Hp), jnp.float32),   # gx chunk
                        pltpu.VMEM((Bc, Hp), jnp.float32)],          # h carry
        compiler_params=pltpu.CompilerParams(
            dimension_semantics=("parallel", "arbitrary"),
            vmem_limit_bytes=32 << 20),
    )(x, w_i, b_i, w_h, b_hn)                                        # (Bp, Tp, Hp)

    # --- Output projection: rows already batch-major; reshape is contiguous/free. ---
    rows = Bp * Tp
    hs2d = hs.reshape(rows, Hp).astype(mm_dtype)
    tm = min(512, _round_up(rows, 8))            # big row tile: w_fc streamed ~once
    rows_p = _round_up(rows, tm)
    if rows_p != rows:
        hs2d = jnp.pad(hs2d, ((0, rows_p - rows), (0, 0)))
    tn = 512 if Vp % 512 == 0 else (256 if Vp % 256 == 0 else 128)

    w_fc = jnp.pad(params["w_fc"], ((0, Hp - H), (0, Vp - V))).astype(mm_dtype)
    b_fc = jnp.pad(params["b_fc"], ((0, 0), (0, Vp - V)))            # (1, Vp) f32

    logits = pl.pallas_call(
        fc_kernel,
        out_shape=jax.ShapeDtypeStruct((rows_p, Vp), jnp.float32),
        grid=(rows_p // tm, Vp // tn),
        in_specs=[pl.BlockSpec((tm, Hp), lambda i, j: (i, 0)),
                  pl.BlockSpec((Hp, tn), lambda i, j: (0, j)),
                  pl.BlockSpec((1, tn), lambda i, j: (0, j))],
        out_specs=pl.BlockSpec((tm, tn), lambda i, j: (i, j)),
        compiler_params=pltpu.CompilerParams(
            dimension_semantics=("parallel", "parallel"),
            vmem_limit_bytes=32 << 20),
    )(hs2d, w_fc, b_fc)

    return logits[:rows].reshape(Bp, Tp, Vp)[:B, :T, :V]


def decoder_rnn_reference(features, captions, params):
    """Pure-JAX reference with identical semantics (for validation)."""
    captions = captions[:, :-1]
    emb = jnp.take(params["embedding"], captions, axis=0)
    x = jnp.concatenate([features[:, None, :], emb], axis=1).astype(jnp.float32)
    B, T, E = x.shape
    H = params["w_hr"].shape[1]

    def step(h, x_t):
        r = jax.nn.sigmoid(x_t @ params["w_ir"] + params["b_ir"]
                           + h @ params["w_hr"] + params["b_hr"])
        z = jax.nn.sigmoid(x_t @ params["w_iz"] + params["b_iz"]
                           + h @ params["w_hz"] + params["b_hz"])
        n = jnp.tanh(x_t @ params["w_in"] + params["b_in"]
                     + r * (h @ params["w_hn"] + params["b_hn"]))
        h_new = (1.0 - z) * n + z * h
        return h_new, h_new

    h0 = jnp.zeros((B, H), jnp.float32)
    _, hs = jax.lax.scan(step, h0, jnp.swapaxes(x, 0, 1))
    hs = jnp.swapaxes(hs, 0, 1)                                     # (B, T, H)
    return hs @ params["w_fc"] + params["b_fc"]


if __name__ == "__main__":
    embed_size = 32
    hidden_size = 32
    vocab_size = 128
    batch = 2
    caption_len = 8   # T after prepending features and dropping last token

    key = jax.random.PRNGKey(0)
    k_p, k_f, k_c = jax.random.split(key, 3)
    params = init_params(k_p, embed_size, hidden_size, vocab_size)

    features = jax.random.normal(k_f, (batch, embed_size), jnp.float32)
    captions = jax.random.randint(k_c, (batch, caption_len), 0, vocab_size, jnp.int32)

    ref = decoder_rnn_reference(features, captions, params)

    # f32 MXU path (default): strict numerical check.
    out = jax.block_until_ready(decoder_rnn_forward(features, captions, params))
    assert out.shape == (batch, caption_len, vocab_size), out.shape
    assert jnp.allclose(out, ref, atol=1e-3, rtol=1e-3), \
        float(jnp.max(jnp.abs(out - ref)))

    # bf16 MXU path (v6e/v7x-native throughput, f32 accumulation): loose check.
    out_bf16 = jax.block_until_ready(
        decoder_rnn_forward(features, captions, params, use_bf16=True))
    assert out_bf16.shape == (batch, caption_len, vocab_size), out_bf16.shape
    assert jnp.allclose(out_bf16, ref, atol=5e-2, rtol=5e-2), \
        float(jnp.max(jnp.abs(out_bf16 - ref)))

    print("KERNEL_OK")
</pallas_src>

<mosaic_0001>
module attributes {stable_mosaic.version = 11 : i64} {
  func.func @fc_kernel(%arg0: i32, %arg1: i32, %arg2: memref<16x128xf32, #tpu.memory_space<vmem>>, %arg3: memref<128x128xf32, #tpu.memory_space<vmem>>, %arg4: memref<1x128xf32, #tpu.memory_space<vmem>>, %arg5: memref<16x128xf32, #tpu.memory_space<vmem>>) attributes {dimension_semantics = [#tpu.dimension_semantics<parallel>, #tpu.dimension_semantics<parallel>], iteration_bounds = array<i64: 1, 1>, scalar_prefetch = 0 : i64, scratch_operands = 0 : i64, tpu.core_type = #tpu.core_type<tc>, window_params = [{transform_indices = @transform_0, window_bounds = array<i64: 16, 128>}, {transform_indices = @transform_1, window_bounds = array<i64: 128, 128>}, {transform_indices = @transform_2, window_bounds = array<i64: 1, 128>}, {transform_indices = @transform_3, window_bounds = array<i64: 16, 128>}]} {
    %c0 = arith.constant 0 : index
    %c0_0 = arith.constant 0 : index
    %0 = vector.load %arg2[%c0, %c0_0] : memref<16x128xf32, #tpu.memory_space<vmem>>, vector<16x128xf32>
    %c0_1 = arith.constant 0 : index
    %c0_2 = arith.constant 0 : index
    %1 = vector.load %arg3[%c0_1, %c0_2] : memref<128x128xf32, #tpu.memory_space<vmem>>, vector<128x128xf32>
    %cst = arith.constant dense<0.000000e+00> : vector<16x128xf32>
    %2 = tpu.matmul %0, %1, %cst {dimension_numbers = #tpu.dot_dimension_numbers<[1], [0], [0], [1], [0, 0, 1, 1], [], []>} : vector<16x128xf32>, vector<128x128xf32>, vector<16x128xf32> -> vector<16x128xf32>
    %c0_3 = arith.constant 0 : index
    %c0_4 = arith.constant 0 : index
    %3 = vector.load %arg4[%c0_3, %c0_4] : memref<1x128xf32, #tpu.memory_space<vmem>>, vector<1x128xf32>
    %4 = vector.broadcast %3 : vector<1x128xf32> to vector<16x128xf32>
    %5 = arith.addf %2, %4 : vector<16x128xf32>
    %c0_5 = arith.constant 0 : index
    %c0_6 = arith.constant 0 : index
    %6 = vector.load %arg5[%c0_5, %c0_6] : memref<16x128xf32, #tpu.memory_space<vmem>>, vector<16x128xf32>
    tpu.vector_store %arg5[%c0_5, %c0_6], %5 {strides = array<i32>} : memref<16x128xf32, #tpu.memory_space<vmem>>, vector<16x128xf32>,
    return
  }
  func.func @transform_0(%arg0: i32, %arg1: i32) -> (i32, i32) {
    %c0_i32 = arith.constant 0 : i32
    %c0_i32_0 = arith.constant 0 : i32
    return %arg0, %c0_i32 : i32, i32
  }
  func.func @transform_1(%arg0: i32, %arg1: i32) -> (i32, i32) {
    %c0_i32 = arith.constant 0 : i32
    %c0_i32_0 = arith.constant 0 : i32
    return %c0_i32, %arg1 : i32, i32
  }
  func.func @transform_2(%arg0: i32, %arg1: i32) -> (i32, i32) {
    %c0_i32 = arith.constant 0 : i32
    %c0_i32_0 = arith.constant 0 : i32
    return %c0_i32, %arg1 : i32, i32
  }
  func.func @transform_3(%arg0: i32, %arg1: i32) -> (i32, i32) {
    %c0_i32 = arith.constant 0 : i32
    return %arg0, %arg1 : i32, i32
  }
}

module attributes {stable_mosaic.version = 11 : i64} {
  func.func @gru_chunk_kernel(%arg0: i32, %arg1: i32, %arg2: memref<2x8x32xf32, #tpu.memory_space<vmem>>, %arg3: memref<32x384xf32, #tpu.memory_space<vmem>>, %arg4: memref<1x384xf32, #tpu.memory_space<vmem>>, %arg5: memref<128x384xf32, #tpu.memory_space<vmem>>, %arg6: memref<1x128xf32, #tpu.memory_space<vmem>>, %arg7: memref<2x8x128xf32, #tpu.memory_space<vmem>>, %arg8: memref<2x8x384xf32, #tpu.memory_space<vmem>>, %arg9: memref<2x128xf32, #tpu.memory_space<vmem>>) attributes {dimension_semantics = [#tpu.dimension_semantics<parallel>, #tpu.dimension_semantics<arbitrary>], iteration_bounds = array<i64: 1, 1>, scalar_prefetch = 0 : i64, scratch_operands = 2 : i64, tpu.core_type = #tpu.core_type<tc>, window_params = [{transform_indices = @transform_0, window_bounds = array<i64: 2, 8, 32>}, {pipeline_mode = #tpu.pipeline_mode<synchronous>, transform_indices = @transform_1, window_bounds = array<i64: 32, 384>}, {pipeline_mode = #tpu.pipeline_mode<synchronous>, transform_indices = @transform_2, window_bounds = array<i64: 1, 384>}, {pipeline_mode = #tpu.pipeline_mode<synchronous>, transform_indices = @transform_3, window_bounds = array<i64: 128, 384>}, {pipeline_mode = #tpu.pipeline_mode<synchronous>, transform_indices = @transform_4, window_bounds = array<i64: 1, 128>}, {transform_indices = @transform_5, window_bounds = array<i64: 2, 8, 128>}]} {
    %c0_i32 = arith.constant 0 : i32
    %0 = arith.cmpi eq, %arg1, %c0_i32 : i32
    %1 = arith.extui %0 : i1 to i32
    %c0_i32_0 = arith.constant 0 : i32
    %2 = arith.cmpi ne, %1, %c0_i32_0 : i32
    scf.if %2 {
      %cst_91 = arith.constant 0.000000e+00 : f32
      %282 = vector.broadcast %cst_91 : f32 to vector<2x128xf32>
      %c0_92 = arith.constant 0 : index
      %c0_93 = arith.constant 0 : index
      %283 = vector.load %arg9[%c0_92, %c0_93] : memref<2x128xf32, #tpu.memory_space<vmem>>, vector<2x128xf32>
      tpu.vector_store %arg9[%c0_92, %c0_93], %282 {strides = array<i32>} : memref<2x128xf32, #tpu.memory_space<vmem>>, vector<2x128xf32>,
    } else {
    }
    %c0 = arith.constant 0 : index
    %c0_1 = arith.constant 0 : index
    %c0_2 = arith.constant 0 : index
    %3 = vector.load %arg2[%c0, %c0_1, %c0_2] : memref<2x8x32xf32, #tpu.memory_space<vmem>>, vector<2x8x32xf32>
    %4 = vector.shape_cast %3 : vector<2x8x32xf32> to vector<16x32xf32>
    %c0_3 = arith.constant 0 : index
    %c0_4 = arith.constant 0 : index
    %5 = vector.load %arg3[%c0_3, %c0_4] : memref<32x384xf32, #tpu.memory_space<vmem>>, vector<32x384xf32>
    %cst = arith.constant dense<0.000000e+00> : vector<16x384xf32>
    %6 = tpu.matmul %4, %5, %cst {dimension_numbers = #tpu.dot_dimension_numbers<[1], [0], [0], [1], [0, 0, 1, 1], [], []>} : vector<16x32xf32>, vector<32x384xf32>, vector<16x384xf32> -> vector<16x384xf32>
    %c0_5 = arith.constant 0 : index
    %c0_6 = arith.constant 0 : index
    %7 = vector.load %arg4[%c0_5, %c0_6] : memref<1x384xf32, #tpu.memory_space<vmem>>, vector<1x384xf32>
    %8 = vector.broadcast %7 : vector<1x384xf32> to vector<16x384xf32>
    %9 = arith.addf %6, %8 : vector<16x384xf32>
    %10 = vector.shape_cast %9 : vector<16x384xf32> to vector<2x8x384xf32>
    %c0_7 = arith.constant 0 : index
    %c0_8 = arith.constant 0 : index
    %c0_9 = arith.constant 0 : index
    %11 = vector.load %arg8[%c0_7, %c0_8, %c0_9] : memref<2x8x384xf32, #tpu.memory_space<vmem>>, vector<2x8x384xf32>
    tpu.vector_store %arg8[%c0_7, %c0_8, %c0_9], %10 {strides = array<i32>} : memref<2x8x384xf32, #tpu.memory_space<vmem>>, vector<2x8x384xf32>,
    %c0_10 = arith.constant 0 : index
    %c0_11 = arith.constant 0 : index
    %12 = vector.load %arg5[%c0_10, %c0_11] : memref<128x384xf32, #tpu.memory_space<vmem>>, vector<128x384xf32>
    %c0_12 = arith.constant 0 : index
    %c0_13 = arith.constant 0 : index
    %13 = vector.load %arg6[%c0_12, %c0_13] : memref<1x128xf32, #tpu.memory_space<vmem>>, vector<1x128xf32>
    %14 = vector.shape_cast %13 : vector<1x128xf32> to vector<1x128xf32>
    %15 = vector.broadcast %14 : vector<1x128xf32> to vector<2x128xf32>
    %c0_14 = arith.constant 0 : index
    %c0_15 = arith.constant 0 : index
    %16 = vector.load %arg9[%c0_14, %c0_15] : memref<2x128xf32, #tpu.memory_space<vmem>>, vector<2x128xf32>
    %c0_16 = arith.constant 0 : index
    %c0_17 = arith.constant 0 : index
    %c0_18 = arith.constant 0 : index
    %17 = vector.load %arg8[%c0_16, %c0_17, %c0_18] : memref<2x8x384xf32, #tpu.memory_space<vmem>>, vector<2x1x384xf32>
    %18 = vector.shape_cast %17 : vector<2x1x384xf32> to vector<2x384xf32>
    %cst_19 = arith.constant dense<0.000000e+00> : vector<2x384xf32>
    %19 = tpu.matmul %16, %12, %cst_19 {dimension_numbers = #tpu.dot_dimension_numbers<[1], [0], [0], [1], [0, 0, 1, 1], [], []>} : vector<2x128xf32>, vector<128x384xf32>, vector<2x384xf32> -> vector<2x384xf32>
    %20 = vector.extract_strided_slice %18 {offsets = [0, 0], sizes = [2, 128], strides = [1, 1]} : vector<2x384xf32> to vector<2x128xf32>
    %21 = vector.extract_strided_slice %19 {offsets = [0, 0], sizes = [2, 128], strides = [1, 1]} : vector<2x384xf32> to vector<2x128xf32>
    %22 = arith.addf %20, %21 : vector<2x128xf32>
    %23 = arith.negf %22 : vector<2x128xf32>
    %24 = math.exp %23 : vector<2x128xf32>
    %cst_20 = arith.constant 1.000000e+00 : f32
    %25 = vector.broadcast %cst_20 : f32 to vector<2x128xf32>
    %26 = arith.addf %25, %24 : vector<2x128xf32>
    %27 = arith.divf %25, %26 : vector<2x128xf32>
    %28 = vector.extract_strided_slice %18 {offsets = [0, 128], sizes = [2, 128], strides = [1, 1]} : vector<2x384xf32> to vector<2x128xf32>
    %29 = vector.extract_strided_slice %19 {offsets = [0, 128], sizes = [2, 128], strides = [1, 1]} : vector<2x384xf32> to vector<2x128xf32>
    %30 = arith.addf %28, %29 : vector<2x128xf32>
    %31 = arith.negf %30 : vector<2x128xf32>
    %32 = math.exp %31 : vector<2x128xf32>
    %cst_21 = arith.constant 1.000000e+00 : f32
    %33 = vector.broadcast %cst_21 : f32 to vector<2x128xf32>
    %34 = arith.addf %33, %32 : vector<2x128xf32>
    %35 = arith.divf %33, %34 : vector<2x128xf32>
    %36 = vector.extract_strided_slice %18 {offsets = [0, 256], sizes = [2, 128], strides = [1, 1]} : vector<2x384xf32> to vector<2x128xf32>
    %37 = vector.extract_strided_slice %19 {offsets = [0, 256], sizes = [2, 128], strides = [1, 1]} : vector<2x384xf32> to vector<2x128xf32>
    %38 = arith.addf %37, %15 : vector<2x128xf32>
    %39 = arith.mulf %27, %38 : vector<2x128xf32>
    %40 = arith.addf %36, %39 : vector<2x128xf32>
    %41 = math.tanh %40 : vector<2x128xf32>
    %cst_22 = arith.constant 1.000000e+00 : f32
    %42 = vector.broadcast %cst_22 : f32 to vector<2x128xf32>
    %43 = arith.subf %42, %35 : vector<2x128xf32>
    %44 = arith.mulf %43, %41 : vector<2x128xf32>
    %45 = arith.mulf %35, %16 : vector<2x128xf32>
    %46 = arith.addf %44, %45 : vector<2x128xf32>
    %c0_23 = arith.constant 0 : index
    %c0_24 = arith.constant 0 : index
    %c0_25 = arith.constant 0 : index
    %47 = vector.load %arg7[%c0_23, %c0_24, %c0_25] : memref<2x8x128xf32, #tpu.memory_space<vmem>>, vector<2x1x128xf32>
    %48 = vector.shape_cast %47 : vector<2x1x128xf32> to vector<2x128xf32>
    %49 = vector.shape_cast %46 : vector<2x128xf32> to vector<2x1x128xf32>
    tpu.vector_store %arg7[%c0_23, %c0_24, %c0_25], %49 {strides = array<i32>} : memref<2x8x128xf32, #tpu.memory_space<vmem>>, vector<2x1x128xf32>,
    %c0_26 = arith.constant 0 : index
    %c1 = arith.constant 1 : index
    %c0_27 = arith.constant 0 : index
    %50 = vector.load %arg8[%c0_26, %c1, %c0_27] : memref<2x8x384xf32, #tpu.memory_space<vmem>>, vector<2x1x384xf32>
    %51 = vector.shape_cast %50 : vector<2x1x384xf32> to vector<2x384xf32>
    %cst_28 = arith.constant dense<0.000000e+00> : vector<2x384xf32>
    %52 = tpu.matmul %46, %12, %cst_28 {dimension_numbers = #tpu.dot_dimension_numbers<[1], [0], [0], [1], [0, 0, 1, 1], [], []>} : vector<2x128xf32>, vector<128x384xf32>, vector<2x384xf32> -> vector<2x384xf32>
    %53 = vector.extract_strided_slice %51 {offsets = [0, 0], sizes = [2, 128], strides = [1, 1]} : vector<2x384xf32> to vector<2x128xf32>
    %54 = vector.extract_strided_slice %52 {offsets = [0, 0], sizes = [2, 128], strides = [1, 1]} : vector<2x384xf32> to vector<2x128xf32>
    %55 = arith.addf %53, %54 : vector<2x128xf32>
    %56 = arith.negf %55 : vector<2x128xf32>
    %57 = math.exp %56 : vector<2x128xf32>
    %cst_29 = arith.constant 1.000000e+00 : f32
    %58 = vector.broadcast %cst_29 : f32 to vector<2x128xf32>
    %59 = arith.addf %58, %57 : vector<2x128xf32>
    %60 = arith.divf %58, %59 : vector<2x128xf32>
    %61 = vector.extract_strided_slice %51 {offsets = [0, 128], sizes = [2, 128], strides = [1, 1]} : vector<2x384xf32> to vector<2x128xf32>
    %62 = vector.extract_strided_slice %52 {offsets = [0, 128], sizes = [2, 128], strides = [1, 1]} : vector<2x384xf32> to vector<2x128xf32>
    %63 = arith.addf %61, %62 : vector<2x128xf32>
    %64 = arith.negf %63 : vector<2x128xf32>
    %65 = math.exp %64 : vector<2x128xf32>
    %cst_30 = arith.constant 1.000000e+00 : f32
    %66 = vector.broadcast %cst_30 : f32 to vector<2x128xf32>
    %67 = arith.addf %66, %65 : vector<2x128xf32>
    %68 = arith.divf %66, %67 : vector<2x128xf32>
    %69 = vector.extract_strided_slice %51 {offsets = [0, 256], sizes = [2, 128], strides = [1, 1]} : vector<2x384xf32> to vector<2x128xf32>
    %70 = vector.extract_strided_slice %52 {offsets = [0, 256], sizes = [2, 128], strides = [1, 1]} : vector<2x384xf32> to vector<2x128xf32>
    %71 = arith.addf %70, %15 : vector<2x128xf32>
    %72 = arith.mulf %60, %71 : vector<2x128xf32>
    %73 = arith.addf %69, %72 : vector<2x128xf32>
    %74 = math.tanh %73 : vector<2x128xf32>
    %cst_31 = arith.constant 1.000000e+00 : f32
    %75 = vector.broadcast %cst_31 : f32 to vector<2x128xf32>
    %76 = arith.subf %75, %68 : vector<2x128xf32>
    %77 = arith.mulf %76, %74 : vector<2x128xf32>
    %78 = arith.mulf %68, %46 : vector<2x128xf32>
    %79 = arith.addf %77, %78 : vector<2x128xf32>
    %c0_32 = arith.constant 0 : index
    %c1_33 = arith.constant 1 : index
    %c0_34 = arith.constant 0 : index
    %80 = vector.load %arg7[%c0_32, %c1_33, %c0_34] : memref<2x8x128xf32, #tpu.memory_space<vmem>>, vector<2x1x128xf32>
    %81 = vector.shape_cast %80 : vector<2x1x128xf32> to vector<2x128xf32>
    %82 = vector.shape_cast %79 : vector<2x128xf32> to vector<2x1x128xf32>
    tpu.vector_store %arg7[%c0_32, %c1_33, %c0_34], %82 {strides = array<i32>} : memref<2x8x128xf32, #tpu.memory_space<vmem>>, vector<2x1x128xf32>,
    %c0_35 = arith.constant 0 : index
    %c2 = arith.constant 2 : index
    %c0_36 = arith.constant 0 : index
    %83 = vector.load %arg8[%c0_35, %c2, %c0_36] : memref<2x8x384xf32, #tpu.memory_space<vmem>>, vector<2x1x384xf32>
    %84 = vector.shape_cast %83 : vector<2x1x384xf32> to vector<2x384xf32>
    %cst_37 = arith.constant dense<0.000000e+00> : vector<2x384xf32>
    %85 = tpu.matmul %79, %12, %cst_37 {dimension_numbers = #tpu.dot_dimension_numbers<[1], [0], [0], [1], [0, 0, 1, 1], [], []>} : vector<2x128xf32>, vector<128x384xf32>, vector<2x384xf32> -> vector<2x384xf32>
    %86 = vector.extract_strided_slice %84 {offsets = [0, 0], sizes = [2, 128], strides = [1, 1]} : vector<2x384xf32> to vector<2x128xf32>
    %87 = vector.extract_strided_slice %85 {offsets = [0, 0], sizes = [2, 128], strides = [1, 1]} : vector<2x384xf32> to vector<2x128xf32>
    %88 = arith.addf %86, %87 : vector<2x128xf32>
    %89 = arith.negf %88 : vector<2x128xf32>
    %90 = math.exp %89 : vector<2x128xf32>
    %cst_38 = arith.constant 1.000000e+00 : f32
    %91 = vector.broadcast %cst_38 : f32 to vector<2x128xf32>
    %92 = arith.addf %91, %90 : vector<2x128xf32>
    %93 = arith.divf %91, %92 : vector<2x128xf32>
    %94 = vector.extract_strided_slice %84 {offsets = [0, 128], sizes = [2, 128], strides = [1, 1]} : vector<2x384xf32> to vector<2x128xf32>
    %95 = vector.extract_strided_slice %85 {offsets = [0, 128], sizes = [2, 128], strides = [1, 1]} : vector<2x384xf32> to vector<2x128xf32>
    %96 = arith.addf %94, %95 : vector<2x128xf32>
    %97 = arith.negf %96 : vector<2x128xf32>
    %98 = math.exp %97 : vector<2x128xf32>
    %cst_39 = arith.constant 1.000000e+00 : f32
    %99 = vector.broadcast %cst_39 : f32 to vector<2x128xf32>
    %100 = arith.addf %99, %98 : vector<2x128xf32>
    %101 = arith.divf %99, %100 : vector<2x128xf32>
    %102 = vector.extract_strided_slice %84 {offsets = [0, 256], sizes = [2, 128], strides = [1, 1]} : vector<2x384xf32> to vector<2x128xf32>
    %103 = vector.extract_strided_slice %85 {offsets = [0, 256], sizes = [2, 128], strides = [1, 1]} : vector<2x384xf32> to vector<2x128xf32>
    %104 = arith.addf %103, %15 : vector<2x128xf32>
    %105 = arith.mulf %93, %104 : vector<2x128xf32>
    %106 = arith.addf %102, %105 : vector<2x128xf32>
    %107 = math.tanh %106 : vector<2x128xf32>
    %cst_40 = arith.constant 1.000000e+00 : f32
    %108 = vector.broadcast %cst_40 : f32 to vector<2x128xf32>
    %109 = arith.subf %108, %101 : vector<2x128xf32>
    %110 = arith.mulf %109, %107 : vector<2x128xf32>
    %111 = arith.mulf %101, %79 : vector<2x128xf32>
    %112 = arith.addf %110, %111 : vector<2x128xf32>
    %c0_41 = arith.constant 0 : index
    %c2_42 = arith.constant 2 : index
    %c0_43 = arith.constant 0 : index
    %113 = vector.load %arg7[%c0_41, %c2_42, %c0_43] : memref<2x8x128xf32, #tpu.memory_space<vmem>>, vector<2x1x128xf32>
    %114 = vector.shape_cast %113 : vector<2x1x128xf32> to vector<2x128xf32>
    %115 = vector.shape_cast %112 : vector<2x128xf32> to vector<2x1x128xf32>
    tpu.vector_store %arg7[%c0_41, %c2_42, %c0_43], %115 {strides = array<i32>} : memref<2x8x128xf32, #tpu.memory_space<vmem>>, vector<2x1x128xf32>,
    %c0_44 = arith.constant 0 : index
    %c3 = arith.constant 3 : index
    %c0_45 = arith.constant 0 : index
    %116 = vector.load %arg8[%c0_44, %c3, %c0_45] : memref<2x8x384xf32, #tpu.memory_space<vmem>>, vector<2x1x384xf32>
    %117 = vector.shape_cast %116 : vector<2x1x384xf32> to vector<2x384xf32>
    %cst_46 = arith.constant dense<0.000000e+00> : vector<2x384xf32>
    %118 = tpu.matmul %112, %12, %cst_46 {dimension_numbers = #tpu.dot_dimension_numbers<[1], [0], [0], [1], [0, 0, 1, 1], [], []>} : vector<2x128xf32>, vector<128x384xf32>, vector<2x384xf32> -> vector<2x384xf32>
    %119 = vector.extract_strided_slice %117 {offsets = [0, 0], sizes = [2, 128], strides = [1, 1]} : vector<2x384xf32> to vector<2x128xf32>
    %120 = vector.extract_strided_slice %118 {offsets = [0, 0], sizes = [2, 128], strides = [1, 1]} : vector<2x384xf32> to vector<2x128xf32>
    %121 = arith.addf %119, %120 : vector<2x128xf32>
    %122 = arith.negf %121 : vector<2x128xf32>
    %123 = math.exp %122 : vector<2x128xf32>
    %cst_47 = arith.constant 1.000000e+00 : f32
    %124 = vector.broadcast %cst_47 : f32 to vector<2x128xf32>
    %125 = arith.addf %124, %123 : vector<2x128xf32>
    %126 = arith.divf %124, %125 : vector<2x128xf32>
    %127 = vector.extract_strided_slice %117 {offsets = [0, 128], sizes = [2, 128], strides = [1, 1]} : vector<2x384xf32> to vector<2x128xf32>
    %128 = vector.extract_strided_slice %118 {offsets = [0, 128], sizes = [2, 128], strides = [1, 1]} : vector<2x384xf32> to vector<2x128xf32>
    %129 = arith.addf %127, %128 : vector<2x128xf32>
    %130 = arith.negf %129 : vector<2x128xf32>
    %131 = math.exp %130 : vector<2x128xf32>
    %cst_48 = arith.constant 1.000000e+00 : f32
    %132 = vector.broadcast %cst_48 : f32 to vector<2x128xf32>
    %133 = arith.addf %132, %131 : vector<2x128xf32>
    %134 = arith.divf %132, %133 : vector<2x128xf32>
    %135 = vector.extract_strided_slice %117 {offsets = [0, 256], sizes = [2, 128], strides = [1, 1]} : vector<2x384xf32> to vector<2x128xf32>
    %136 = vector.extract_strided_slice %118 {offsets = [0, 256], sizes = [2, 128], strides = [1, 1]} : vector<2x384xf32> to vector<2x128xf32>
    %137 = arith.addf %136, %15 : vector<2x128xf32>
    %138 = arith.mulf %126, %137 : vector<2x128xf32>
    %139 = arith.addf %135, %138 : vector<2x128xf32>
    %140 = math.tanh %139 : vector<2x128xf32>
    %cst_49 = arith.constant 1.000000e+00 : f32
    %141 = vector.broadcast %cst_49 : f32 to vector<2x128xf32>
    %142 = arith.subf %141, %134 : vector<2x128xf32>
    %143 = arith.mulf %142, %140 : vector<2x128xf32>
    %144 = arith.mulf %134, %112 : vector<2x128xf32>
    %145 = arith.addf %143, %144 : vector<2x128xf32>
    %c0_50 = arith.constant 0 : index
    %c3_51 = arith.constant 3 : index
    %c0_52 = arith.constant 0 : index
    %146 = vector.load %arg7[%c0_50, %c3_51, %c0_52] : memref<2x8x128xf32, #tpu.memory_space<vmem>>, vector<2x1x128xf32>
    %147 = vector.shape_cast %146 : vector<2x1x128xf32> to vector<2x128xf32>
    %148 = vector.shape_cast %145 : vector<2x128xf32> to vector<2x1x128xf32>
    tpu.vector_store %arg7[%c0_50, %c3_51, %c0_52], %148 {strides = array<i32>} : memref<2x8x128xf32, #tpu.memory_space<vmem>>, vector<2x1x128xf32>,
    %c0_53 = arith.constant 0 : index
    %c4 = arith.constant 4 : index
    %c0_54 = arith.constant 0 : index
    %149 = vector.load %arg8[%c0_53, %c4, %c0_54] : memref<2x8x384xf32, #tpu.memory_space<vmem>>, vector<2x1x384xf32>
    %150 = vector.shape_cast %149 : vector<2x1x384xf32> to vector<2x384xf32>
    %cst_55 = arith.constant dense<0.000000e+00> : vector<2x384xf32>
    %151 = tpu.matmul %145, %12, %cst_55 {dimension_numbers = #tpu.dot_dimension_numbers<[1], [0], [0], [1], [0, 0, 1, 1], [], []>} : vector<2x128xf32>, vector<128x384xf32>, vector<2x384xf32> -> vector<2x384xf32>
    %152 = vector.extract_strided_slice %150 {offsets = [0, 0], sizes = [2, 128], strides = [1, 1]} : vector<2x384xf32> to vector<2x128xf32>
    %153 = vector.extract_strided_slice %151 {offsets = [0, 0], sizes = [2, 128], strides = [1, 1]} : vector<2x384xf32> to vector<2x128xf32>
    %154 = arith.addf %152, %153 : vector<2x128xf32>
    %155 = arith.negf %154 : vector<2x128xf32>
    %156 = math.exp %155 : vector<2x128xf32>
    %cst_56 = arith.constant 1.000000e+00 : f32
    %157 = vector.broadcast %cst_56 : f32 to vector<2x128xf32>
    %158 = arith.addf %157, %156 : vector<2x128xf32>
    %159 = arith.divf %157, %158 : vector<2x128xf32>
    %160 = vector.extract_strided_slice %150 {offsets = [0, 128], sizes = [2, 128], strides = [1, 1]} : vector<2x384xf32> to vector<2x128xf32>
    %161 = vector.extract_strided_slice %151 {offsets = [0, 128], sizes = [2, 128], strides = [1, 1]} : vector<2x384xf32> to vector<2x128xf32>
    %162 = arith.addf %160, %161 : vector<2x128xf32>
    %163 = arith.negf %162 : vector<2x128xf32>
    %164 = math.exp %163 : vector<2x128xf32>
    %cst_57 = arith.constant 1.000000e+00 : f32
    %165 = vector.broadcast %cst_57 : f32 to vector<2x128xf32>
    %166 = arith.addf %165, %164 : vector<2x128xf32>
    %167 = arith.divf %165, %166 : vector<2x128xf32>
    %168 = vector.extract_strided_slice %150 {offsets = [0, 256], sizes = [2, 128], strides = [1, 1]} : vector<2x384xf32> to vector<2x128xf32>
    %169 = vector.extract_strided_slice %151 {offsets = [0, 256], sizes = [2, 128], strides = [1, 1]} : vector<2x384xf32> to vector<2x128xf32>
    %170 = arith.addf %169, %15 : vector<2x128xf32>
    %171 = arith.mulf %159, %170 : vector<2x128xf32>
    %172 = arith.addf %168, %171 : vector<2x128xf32>
    %173 = math.tanh %172 : vector<2x128xf32>
    %cst_58 = arith.constant 1.000000e+00 : f32
    %174 = vector.broadcast %cst_58 : f32 to vector<2x128xf32>
    %175 = arith.subf %174, %167 : vector<2x128xf32>
    %176 = arith.mulf %175, %173 : vector<2x128xf32>
    %177 = arith.mulf %167, %145 : vector<2x128xf32>
    %178 = arith.addf %176, %177 : vector<2x128xf32>
    %c0_59 = arith.constant 0 : index
    %c4_60 = arith.constant 4 : index
    %c0_61 = arith.constant 0 : index
    %179 = vector.load %arg7[%c0_59, %c4_60, %c0_61] : memref<2x8x128xf32, #tpu.memory_space<vmem>>, vector<2x1x128xf32>
    %180 = vector.shape_cast %179 : vector<2x1x128xf32> to vector<2x128xf32>
    %181 = vector.shape_cast %178 : vector<2x128xf32> to vector<2x1x128xf32>
    tpu.vector_store %arg7[%c0_59, %c4_60, %c0_61], %181 {strides = array<i32>} : memref<2x8x128xf32, #tpu.memory_space<vmem>>, vector<2x1x128xf32>,
    %c0_62 = arith.constant 0 : index
    %c5 = arith.constant 5 : index
    %c0_63 = arith.constant 0 : index
    %182 = vector.load %arg8[%c0_62, %c5, %c0_63] : memref<2x8x384xf32, #tpu.memory_space<vmem>>, vector<2x1x384xf32>
    %183 = vector.shape_cast %182 : vector<2x1x384xf32> to vector<2x384xf32>
    %cst_64 = arith.constant dense<0.000000e+00> : vector<2x384xf32>
    %184 = tpu.matmul %178, %12, %cst_64 {dimension_numbers = #tpu.dot_dimension_numbers<[1], [0], [0], [1], [0, 0, 1, 1], [], []>} : vector<2x128xf32>, vector<128x384xf32>, vector<2x384xf32> -> vector<2x384xf32>
    %185 = vector.extract_strided_slice %183 {offsets = [0, 0], sizes = [2, 128], strides = [1, 1]} : vector<2x384xf32> to vector<2x128xf32>
    %186 = vector.extract_strided_slice %184 {offsets = [0, 0], sizes = [2, 128], strides = [1, 1]} : vector<2x384xf32> to vector<2x128xf32>
    %187 = arith.addf %185, %186 : vector<2x128xf32>
    %188 = arith.negf %187 : vector<2x128xf32>
    %189 = math.exp %188 : vector<2x128xf32>
    %cst_65 = arith.constant 1.000000e+00 : f32
    %190 = vector.broadcast %cst_65 : f32 to vector<2x128xf32>
    %191 = arith.addf %190, %189 : vector<2x128xf32>
    %192 = arith.divf %190, %191 : vector<2x128xf32>
    %193 = vector.extract_strided_slice %183 {offsets = [0, 128], sizes = [2, 128], strides = [1, 1]} : vector<2x384xf32> to vector<2x128xf32>
    %194 = vector.extract_strided_slice %184 {offsets = [0, 128], sizes = [2, 128], strides = [1, 1]} : vector<2x384xf32> to vector<2x128xf32>
    %195 = arith.addf %193, %194 : vector<2x128xf32>
    %196 = arith.negf %195 : vector<2x128xf32>
    %197 = math.exp %196 : vector<2x128xf32>
    %cst_66 = arith.constant 1.000000e+00 : f32
    %198 = vector.broadcast %cst_66 : f32 to vector<2x128xf32>
    %199 = arith.addf %198, %197 : vector<2x128xf32>
    %200 = arith.divf %198, %199 : vector<2x128xf32>
    %201 = vector.extract_strided_slice %183 {offsets = [0, 256], sizes = [2, 128], strides = [1, 1]} : vector<2x384xf32> to vector<2x128xf32>
    %202 = vector.extract_strided_slice %184 {offsets = [0, 256], sizes = [2, 128], strides = [1, 1]} : vector<2x384xf32> to vector<2x128xf32>
    %203 = arith.addf %202, %15 : vector<2x128xf32>
    %204 = arith.mulf %192, %203 : vector<2x128xf32>
    %205 = arith.addf %201, %204 : vector<2x128xf32>
    %206 = math.tanh %205 : vector<2x128xf32>
    %cst_67 = arith.constant 1.000000e+00 : f32
    %207 = vector.broadcast %cst_67 : f32 to vector<2x128xf32>
    %208 = arith.subf %207, %200 : vector<2x128xf32>
    %209 = arith.mulf %208, %206 : vector<2x128xf32>
    %210 = arith.mulf %200, %178 : vector<2x128xf32>
    %211 = arith.addf %209, %210 : vector<2x128xf32>
    %c0_68 = arith.constant 0 : index
    %c5_69 = arith.constant 5 : index
    %c0_70 = arith.constant 0 : index
    %212 = vector.load %arg7[%c0_68, %c5_69, %c0_70] : memref<2x8x128xf32, #tpu.memory_space<vmem>>, vector<2x1x128xf32>
    %213 = vector.shape_cast %212 : vector<2x1x128xf32> to vector<2x128xf32>
    %214 = vector.shape_cast %211 : vector<2x128xf32> to vector<2x1x128xf32>
    tpu.vector_store %arg7[%c0_68, %c5_69, %c0_70], %214 {strides = array<i32>} : memref<2x8x128xf32, #tpu.memory_space<vmem>>, vector<2x1x128xf32>,
    %c0_71 = arith.constant 0 : index
    %c6 = arith.constant 6 : index
    %c0_72 = arith.constant 0 : index
    %215 = vector.load %arg8[%c0_71, %c6, %c0_72] : memref<2x8x384xf32, #tpu.memory_space<vmem>>, vector<2x1x384xf32>
    %216 = vector.shape_cast %215 : vector<2x1x384xf32> to vector<2x384xf32>
    %cst_73 = arith.constant dense<0.000000e+00> : vector<2x384xf32>
    %217 = tpu.matmul %211, %12, %cst_73 {dimension_numbers = #tpu.dot_dimension_numbers<[1], [0], [0], [1], [0, 0, 1, 1], [], []>} : vector<2x128xf32>, vector<128x384xf32>, vector<2x384xf32> -> vector<2x384xf32>
    %218 = vector.extract_strided_slice %216 {offsets = [0, 0], sizes = [2, 128], strides = [1, 1]} : vector<2x384xf32> to vector<2x128xf32>
    %219 = vector.extract_strided_slice %217 {offsets = [0, 0], sizes = [2, 128], strides = [1, 1]} : vector<2x384xf32> to vector<2x128xf32>
    %220 = arith.addf %218, %219 : vector<2x128xf32>
    %221 = arith.negf %220 : vector<2x128xf32>
    %222 = math.exp %221 : vector<2x128xf32>
    %cst_74 = arith.constant 1.000000e+00 : f32
    %223 = vector.broadcast %cst_74 : f32 to vector<2x128xf32>
    %224 = arith.addf %223, %222 : vector<2x128xf32>
    %225 = arith.divf %223, %224 : vector<2x128xf32>
    %226 = vector.extract_strided_slice %216 {offsets = [0, 128], sizes = [2, 128], strides = [1, 1]} : vector<2x384xf32> to vector<2x128xf32>
    %227 = vector.extract_strided_slice %217 {offsets = [0, 128], sizes = [2, 128], strides = [1, 1]} : vector<2x384xf32> to vector<2x128xf32>
    %228 = arith.addf %226, %227 : vector<2x128xf32>
    %229 = arith.negf %228 : vector<2x128xf32>
    %230 = math.exp %229 : vector<2x128xf32>
    %cst_75 = arith.constant 1.000000e+00 : f32
    %231 = vector.broadcast %cst_75 : f32 to vector<2x128xf32>
    %232 = arith.addf %231, %230 : vector<2x128xf32>
    %233 = arith.divf %231, %232 : vector<2x128xf32>
    %234 = vector.extract_strided_slice %216 {offsets = [0, 256], sizes = [2, 128], strides = [1, 1]} : vector<2x384xf32> to vector<2x128xf32>
    %235 = vector.extract_strided_slice %217 {offsets = [0, 256], sizes = [2, 128], strides = [1, 1]} : vector<2x384xf32> to vector<2x128xf32>
    %236 = arith.addf %235, %15 : vector<2x128xf32>
    %237 = arith.mulf %225, %236 : vector<2x128xf32>
    %238 = arith.addf %234, %237 : vector<2x128xf32>
    %239 = math.tanh %238 : vector<2x128xf32>
    %cst_76 = arith.constant 1.000000e+00 : f32
    %240 = vector.broadcast %cst_76 : f32 to vector<2x128xf32>
    %241 = arith.subf %240, %233 : vector<2x128xf32>
    %242 = arith.mulf %241, %239 : vector<2x128xf32>
    %243 = arith.mulf %233, %211 : vector<2x128xf32>
    %244 = arith.addf %242, %243 : vector<2x128xf32>
    %c0_77 = arith.constant 0 : index
    %c6_78 = arith.constant 6 : index
    %c0_79 = arith.constant 0 : index
    %245 = vector.load %arg7[%c0_77, %c6_78, %c0_79] : memref<2x8x128xf32, #tpu.memory_space<vmem>>, vector<2x1x128xf32>
    %246 = vector.shape_cast %245 : vector<2x1x128xf32> to vector<2x128xf32>
    %247 = vector.shape_cast %244 : vector<2x128xf32> to vector<2x1x128xf32>
    tpu.vector_store %arg7[%c0_77, %c6_78, %c0_79], %247 {strides = array<i32>} : memref<2x8x128xf32, #tpu.memory_space<vmem>>, vector<2x1x128xf32>,
    %c0_80 = arith.constant 0 : index
    %c7 = arith.constant 7 : index
    %c0_81 = arith.constant 0 : index
    %248 = vector.load %arg8[%c0_80, %c7, %c0_81] : memref<2x8x384xf32, #tpu.memory_space<vmem>>, vector<2x1x384xf32>
    %249 = vector.shape_cast %248 : vector<2x1x384xf32> to vector<2x384xf32>
    %cst_82 = arith.constant dense<0.000000e+00> : vector<2x384xf32>
    %250 = tpu.matmul %244, %12, %cst_82 {dimension_numbers = #tpu.dot_dimension_numbers<[1], [0], [0], [1], [0, 0, 1, 1], [], []>} : vector<2x128xf32>, vector<128x384xf32>, vector<2x384xf32> -> vector<2x384xf32>
    %251 = vector.extract_strided_slice %249 {offsets = [0, 0], sizes = [2, 128], strides = [1, 1]} : vector<2x384xf32> to vector<2x128xf32>
    %252 = vector.extract_strided_slice %250 {offsets = [0, 0], sizes = [2, 128], strides = [1, 1]} : vector<2x384xf32> to vector<2x128xf32>
    %253 = arith.addf %251, %252 : vector<2x128xf32>
    %254 = arith.negf %253 : vector<2x128xf32>
    %255 = math.exp %254 : vector<2x128xf32>
    %cst_83 = arith.constant 1.000000e+00 : f32
    %256 = vector.broadcast %cst_83 : f32 to vector<2x128xf32>
    %257 = arith.addf %256, %255 : vector<2x128xf32>
    %258 = arith.divf %256, %257 : vector<2x128xf32>
    %259 = vector.extract_strided_slice %249 {offsets = [0, 128], sizes = [2, 128], strides = [1, 1]} : vector<2x384xf32> to vector<2x128xf32>
    %260 = vector.extract_strided_slice %250 {offsets = [0, 128], sizes = [2, 128], strides = [1, 1]} : vector<2x384xf32> to vector<2x128xf32>
    %261 = arith.addf %259, %260 : vector<2x128xf32>
    %262 = arith.negf %261 : vector<2x128xf32>
    %263 = math.exp %262 : vector<2x128xf32>
    %cst_84 = arith.constant 1.000000e+00 : f32
    %264 = vector.broadcast %cst_84 : f32 to vector<2x128xf32>
    %265 = arith.addf %264, %263 : vector<2x128xf32>
    %266 = arith.divf %264, %265 : vector<2x128xf32>
    %267 = vector.extract_strided_slice %249 {offsets = [0, 256], sizes = [2, 128], strides = [1, 1]} : vector<2x384xf32> to vector<2x128xf32>
    %268 = vector.extract_strided_slice %250 {offsets = [0, 256], sizes = [2, 128], strides = [1, 1]} : vector<2x384xf32> to vector<2x128xf32>
    %269 = arith.addf %268, %15 : vector<2x128xf32>
    %270 = arith.mulf %258, %269 : vector<2x128xf32>
    %271 = arith.addf %267, %270 : vector<2x128xf32>
    %272 = math.tanh %271 : vector<2x128xf32>
    %cst_85 = arith.constant 1.000000e+00 : f32
    %273 = vector.broadcast %cst_85 : f32 to vector<2x128xf32>
    %274 = arith.subf %273, %266 : vector<2x128xf32>
    %275 = arith.mulf %274, %272 : vector<2x128xf32>
    %276 = arith.mulf %266, %244 : vector<2x128xf32>
    %277 = arith.addf %275, %276 : vector<2x128xf32>
    %c0_86 = arith.constant 0 : index
    %c7_87 = arith.constant 7 : index
    %c0_88 = arith.constant 0 : index
    %278 = vector.load %arg7[%c0_86, %c7_87, %c0_88] : memref<2x8x128xf32, #tpu.memory_space<vmem>>, vector<2x1x128xf32>
    %279 = vector.shape_cast %278 : vector<2x1x128xf32> to vector<2x128xf32>
    %280 = vector.shape_cast %277 : vector<2x128xf32> to vector<2x1x128xf32>
    tpu.vector_store %arg7[%c0_86, %c7_87, %c0_88], %280 {strides = array<i32>} : memref<2x8x128xf32, #tpu.memory_space<vmem>>, vector<2x1x128xf32>,
    %c0_89 = arith.constant 0 : index
    %c0_90 = arith.constant 0 : index
    %281 = vector.load %arg9[%c0_89, %c0_90] : memref<2x128xf32, #tpu.memory_space<vmem>>, vector<2x128xf32>
    tpu.vector_store %arg9[%c0_89, %c0_90], %277 {strides = array<i32>} : memref<2x128xf32, #tpu.memory_space<vmem>>, vector<2x128xf32>,
    return
  }
  func.func @transform_0(%arg0: i32, %arg1: i32) -> (i32, i32, i32) {
    %c0_i32 = arith.constant 0 : i32
    %c0_i32_0 = arith.constant 0 : i32
    return %arg0, %arg1, %c0_i32 : i32, i32, i32
  }
  func.func @transform_1(%arg0: i32, %arg1: i32) -> (i32, i32) {
    %c0_i32 = arith.constant 0 : i32
    %c0_i32_0 = arith.constant 0 : i32
    %c0_i32_1 = arith.constant 0 : i32
    return %c0_i32, %c0_i32_0 : i32, i32
  }
  func.func @transform_2(%arg0: i32, %arg1: i32) -> (i32, i32) {
    %c0_i32 = arith.constant 0 : i32
    %c0_i32_0 = arith.constant 0 : i32
    %c0_i32_1 = arith.constant 0 : i32
    return %c0_i32, %c0_i32_0 : i32, i32
  }
  func.func @transform_3(%arg0: i32, %arg1: i32) -> (i32, i32) {
    %c0_i32 = arith.constant 0 : i32
    %c0_i32_0 = arith.constant 0 : i32
    %c0_i32_1 = arith.constant 0 : i32
    return %c0_i32, %c0_i32_0 : i32, i32
  }
  func.func @transform_4(%arg0: i32, %arg1: i32) -> (i32, i32) {
    %c0_i32 = arith.constant 0 : i32
    %c0_i32_0 = arith.constant 0 : i32
    %c0_i32_1 = arith.constant 0 : i32
    return %c0_i32, %c0_i32_0 : i32, i32
  }
  func.func @transform_5(%arg0: i32, %arg1: i32) -> (i32, i32, i32) {
    %c0_i32 = arith.constant 0 : i32
    %c0_i32_0 = arith.constant 0 : i32
    return %arg0, %arg1, %c0_i32 : i32, i32, i32
  }
}

</mosaic_0001>

<bundles_post_ra>
// kernel: decoder_rnn_forward.3
= control target key start
LH: loop header
LB: loop body
LE: loop exit
PB: predicated region body
PF: predicated region fallthrough
CT: control target
= control target key end

     0   :  { %s295_s0 = inlined_call_operand.vmem [shape: f32[16,128], index: 0, kind: input, shape index: {}]   ;;  %s296_s1 = inlined_call_operand.vmem [shape: f32[128,128], index: 1, kind: input, shape index: {}]   ;;  %s297_s2 = inlined_call_operand.vmem [shape: f32[1,128], index: 2, kind: input, shape index: {}]   ;;  %s298_s3 = inlined_call_operand.hbm [shape: f32[16,128], index: 3, kind: output, shape index: {}]  }
   0x1   :  { %v32_v0 = vld [vmem:[%s296_s1 + $0x78] sm:$0xff]  ;;  %v31_v1 = vld [vmem:[%s296_s1 + $0x70] sm:$0xff]  ;;  %v30_v2 = vld [vmem:[%s296_s1 + $0x68] sm:$0xff] }
   0x2   :  { %152 = vmatprep.subr.mxu0 %v32_v0  ;;  %v29_v3 = vld [vmem:[%s296_s1 + $0x60] sm:$0xff]  ;;  %v28_v5 = vld [vmem:[%s296_s1 + $0x58] sm:$0xff] }
   0x3   :  { %153 = vmatpush3.msra.mxu0 %v32_v0  ;;  %v15_v4 = vld [vmem:[%s295_s0] sm:$0xff] }
   0x4   :  { %154 = vmatprep.subr.mxu0 %v31_v1  ;;  %184 = vmatprep.mubr.f32.mxu0 %v15_v4 }
   0x5   :  { %155 = vmatpush3.msra.mxu0 %v31_v1 }
   0x6   :  { %156 = vmatprep.subr.mxu0 %v30_v2 }
   0x7   :  { %157 = vmatpush3.msra.mxu0 %v30_v2 }
   0x8   :  { %8 = vsyncpa [#allocation3], 0  ;;  %158 = vmatprep.subr.mxu0 %v29_v3  ;;  %v27_v6 = vld [vmem:[%s296_s1 + $0x50] sm:$0xff]  ;;  %v26_v7 = vld [vmem:[%s296_s1 + $0x48] sm:$0xff]  ;;  %s212_s23 = smov [#allocation2]  }
   0x9   :  { %159 = vmatpush3.msra.mxu0 %v29_v3  ;;  %v25_v8 = vld [vmem:[%s296_s1 + $0x40] sm:$0xff]  ;;  %v24_v9 = vld [vmem:[%s296_s1 + $0x38] sm:$0xff]  ;;  %v23_v10 = vld [vmem:[%s296_s1 + $0x30] sm:$0xff]  ;;  %s122_s24 = sshll.u32 %s212_s23, 4  ;;  %s123_s24 = int_to_ptr.vmem [resolvable:$true] %s122_s24 }
   0xa   :  { %160 = vmatprep.subr.mxu0 %v28_v5  ;;  %v22_v11 = vld [vmem:[%s296_s1 + $0x28] sm:$0xff]  ;;  %v21_v12 = vld [vmem:[%s296_s1 + $0x20] sm:$0xff]  ;;  %v20_v13 = vld [vmem:[%s296_s1 + $0x18] sm:$0xff]  ;;  %p195_p1 = scmp.lt.s32.totalorder %s123_s24, %s123_s24 }
   0xb   :  { %161 = vmatpush3.msra.mxu0 %v28_v5  ;;  %v19_v14 = vld [vmem:[%s296_s1 + $0x10] sm:$0xff]  ;;  %v18_v15 = vld [vmem:[%s296_s1 + $0x8] sm:$0xff]  ;;  %v17_v16 = vld [vmem:[%s296_s1] sm:$0xff]  ;;  %s190_s1 = scalar_lea.vmem %s123_s24, 256 }
   0xc   :  { %162 = vmatprep.subr.mxu0 %v27_v6  ;;  %v16_v17 = vld [vmem:[%s295_s0 + $0x8] sm:$0xff]  ;;  %v133_v18 = vld [vmem:[%s297_s2] ss:$0 sm:$0xff]  ;;  %p191_p0 = scmp.ne.s32.totalorder %s123_s24, %s190_s1  ;;  %p196_p2 = scmp.lt.s32.totalorder %s190_s1, %s190_s1 }
   0xd   :  { %163 = vmatpush3.msra.mxu0 %v27_v6 }
   0xe   :  { %164 = vmatprep.subr.mxu0 %v26_v7  ;;  %p197_p3 = por %p196_p2, %p195_p1 }
   0xf   :  { %165 = vmatpush3.msra.mxu0 %v26_v7 }
  0x10   :  { %166 = vmatprep.subr.mxu0 %v25_v8  ;;  %p198_p4 = pnand %p197_p3, %p191_p0 }
  0x11   :  { %167 = vmatpush3.msra.mxu0 %v25_v8 }
  0x12   :  { %168 = vmatprep.subr.mxu0 %v24_v9 }
  0x13   :  { %169 = vmatpush3.msra.mxu0 %v24_v9 }
  0x14   :  { %170 = vmatprep.subr.mxu0 %v23_v10 }
  0x15   :  { %171 = vmatpush3.msra.mxu0 %v23_v10 }
  0x16   :  { %172 = vmatprep.subr.mxu0 %v22_v11 }
  0x17   :  { %173 = vmatpush3.msra.mxu0 %v22_v11 }
  0x18   :  { %174 = vmatprep.subr.mxu0 %v21_v12 }
  0x19   :  { %175 = vmatpush3.msra.mxu0 %v21_v12 }
  0x1a   :  { %176 = vmatprep.subr.mxu0 %v20_v13 }
  0x1b   :  { %177 = vmatpush3.msra.mxu0 %v20_v13 }
  0x1c   :  { %178 = vmatprep.subr.mxu0 %v19_v14 }
  0x1d   :  { %179 = vmatpush3.msra.mxu0 %v19_v14 }
  0x1e   :  { %180 = vmatprep.subr.mxu0 %v18_v15 }
  0x1f   :  { %181 = vmatpush3.msra.mxu0 %v18_v15 }
  0x20   :  { %182 = vmatprep.subr.mxu0 %v17_v16 }
  0x21   :  { %183 = vmatpush3.msra.mxu0 %v17_v16 }
  0x22   :  { %185 = vmatmul.mubr.f32.vlgmr.msra.gmra.mxu0 %v16_v17 }
  0xe2   :  { %v186_v19 = vpop.f32.mrf.mxu0 }
  0xe3   :  { %v112_v20 = vadd.f32 %v186_v19, %v133_v18 }
  0xe4   :  { %v106_v21 = vpop.f32.mrf.mxu0 }
  0xe5   :  { %116 = vst [vmem:[#allocation2 + $0x8] sm:$0xff] %v112_v20  ;;  %v107_v22 = vadd.f32 %v133_v18, %v106_v21 }
  0xe7   :  { %115 = vst [vmem:[#allocation2] sm:$0xff] %v107_v22 }
  0xe8   :  { %201 = shalt.err (!%p198_p4)
}
  0xe9   :  { %s213_s0 = smov 128   ;;  %s214_s25 = smov 8  }
  0xea   :  { %128 = dma.vmem_to_hbm [thread:$0]  %s123_s24, 256, %s298_s3, [#allocation3], %s213_s0, %s213_s0, %s214_s25  }
  0xeb   :  { %210 = dma.done.wait [#allocation3], 256  }
  0xec   :  { %211 = vsyncadd [#allocation3], 4294967040 }
  0xed   :  { %132 = vsyncpa [#allocation3], 1 }

// kernel: decoder_rnn_forward.2
= control target key start
LH: loop header
LB: loop body
LE: loop exit
PB: predicated region body
PF: predicated region fallthrough
CT: control target
= control target key end

     0   :  { %v4675_v3 = vmov 0.0   ;;  %vm56_vm0 = vcmask 261120   ;;  %vm3334_vm1 = vmmov 0   ;;  %s4667_s1 = inlined_call_operand.vmem [shape: f32[32,384], index: 1, kind: input, shape index: {}]   ;;  %s4668_s0 = inlined_call_operand.vmem [shape: f32[2,8,32], index: 0, kind: input, shape index: {}]   ;;  %s4669_s3 = inlined_call_operand.vmem [shape: f32[128,384], index: 3, kind: input, shape index: {}]   ;;  %s4670_s2 = inlined_call_operand.vmem [shape: f32[1,384], index: 2, kind: input, shape index: {}]   ;;  %s4671_s4 = inlined_call_operand.vmem [shape: f32[1,128], index: 4, kind: input, shape index: {}]   ;;  %s4672_s5 = inlined_call_operand.vmem [shape: f32[2,8,128], index: 5, kind: output, shape index: {}]  }
   0x1   :  { %v37_v0 = vld [vmem:[%s4667_s1 + $0x50] sm:$0xff]  ;;  %v38_v1 = vld [vmem:[%s4667_s1 + $0x58] sm:$0xff]  ;;  %v36_v2 = vld [vmem:[%s4667_s1 + $0x48] sm:$0xff]  ;;  %127 = vmatprep.mubr.f32.mxu0 %v4675_v3  ;;  %24 = vst [vmem:[#allocation3] sm:$0x3] %v4675_v3 }
   0x2   :  { %87 = vmatprep.subr.mxu0 %v37_v0  ;;  %2830 = vmatprep.subr.mxu1 %v38_v1  ;;  %v34_v4 = vld [vmem:[%s4667_s1 + $0x38] sm:$0xff]  ;;  %v35_v5 = vld [vmem:[%s4667_s1 + $0x40] sm:$0xff]  ;;  %v33_v6 = vld [vmem:[%s4667_s1 + $0x30] sm:$0xff]  ;;  %v41_v0 = vlaneseq }
   0x3   :  { %88 = vmatpush1.msra.mxu0 %v36_v2  ;;  %2831 = vmatpush3.msra.mxu1 %v38_v1  ;;  %v31_v7 = vld [vmem:[%s4667_s1 + $0x20] sm:$0xff]  ;;  %v32_v8 = vld [vmem:[%s4667_s1 + $0x28] sm:$0xff]  ;;  %v30_v9 = vld [vmem:[%s4667_s1 + $0x18] sm:$0xff] }
   0x4   :  { %89 = vmatprep.subr.mxu0 %v34_v4  ;;  %2832 = vmatprep.subr.mxu1 %v35_v5  ;;  %v28_v10 = vld [vmem:[%s4667_s1 + $0x8] sm:$0xff]  ;;  %v29_v11 = vld [vmem:[%s4667_s1 + $0x10] sm:$0xff]  ;;  %v27_v12 = vld [vmem:[%s4667_s1] sm:$0xff]  ;;  %v42_v1 = vshrl.u32 %v41_v0, 7 }
   0x5   :  { %90 = vmatpush1.msra.mxu0 %v33_v6  ;;  %2833 = vmatpush3.msra.mxu1 %v35_v5  ;;  %v25_v13 = vld [vmem:[%s4668_s0] sm:$0xff]  ;;  %v26_v14 = vld [vmem:[%s4668_s0 + $0x8] sm:$0xff]  ;;  %v3413_v15 = vld [vmem:[%s4669_s3 + $0x170] sm:$0xff] }
   0x6   :  { %91 = vmatprep.subr.mxu0 %v31_v7  ;;  %2834 = vmatprep.subr.mxu1 %v32_v8  ;;  %4715 = vst [vmem:[#allocation4_spill] sm:$0xff] %v3413_v15  ;;  %v3418_v16 = vld [vmem:[%s4669_s3 + $0x168] sm:$0xff]  ;;  %v3425_v17 = vld [vmem:[%s4669_s3 + $0x158] sm:$0xff]  ;;  %v3432_v18 = vld [vmem:[%s4669_s3 + $0x150] sm:$0xff]  ;;  %v43_v2 = vsub.s32 0, %v42_v1  ;;  %v47_v5 = vsub.s32 1, %v42_v1 }
   0x7   :  { %92 = vmatpush1.msra.mxu0 %v30_v9  ;;  %2835 = vmatpush3.msra.mxu1 %v32_v8  ;;  %v3438_v19 = vld [vmem:[%s4669_s3 + $0x140] sm:$0xff]  ;;  %v3445_v20 = vld [vmem:[%s4669_s3 + $0x138] sm:$0xff]  ;;  %v3452_v21 = vld [vmem:[%s4669_s3 + $0x128] sm:$0xff]  ;;  %v51_v6 = vsub.s32 2, %v42_v1 }
   0x8   :  { %93 = vmatprep.subr.mxu0 %v28_v10  ;;  %2836 = vmatprep.subr.mxu1 %v29_v11  ;;  %v3460_v22 = vld [vmem:[%s4669_s3 + $0x120] sm:$0xff]  ;;  %v3467_v23 = vld [vmem:[%s4669_s3 + $0x110] sm:$0xff]  ;;  %v3473_v24 = vld [vmem:[%s4669_s3 + $0x178] sm:$0xff] }
   0x9   :  { %94 = vmatpush1.msra.mxu0 %v27_v12  ;;  %2837 = vmatpush3.msra.mxu1 %v29_v11  ;;  %v3479_v25 = vld [vmem:[%s4669_s3 + $0x108] sm:$0xff]  ;;  %v3485_v26 = vld [vmem:[%s4669_s3 + $0x160] sm:$0xff]  ;;  %v3491_v27 = vld [vmem:[%s4669_s3 + $0xf8] sm:$0xff] }
   0xa   :  { %2838 = vmatprep.mubr.msk.f32.mxu1 %vm56_vm0, %v25_v13  ;;  %2650 = vmatmul.mubr.msk.f32.vlgmr.msra.gmra.mxu0 %vm56_vm0, %v25_v13  ;;  %v3497_v28 = vld [vmem:[%s4669_s3 + $0x148] sm:$0xff]  ;;  %v3503_v29 = vld [vmem:[%s4669_s3 + $0xf0] sm:$0xff]  ;;  %v3510_v30 = vld [vmem:[%s4669_s3 + $0xe0] sm:$0xff] }
   0xb   :  { %2839 = vmatmul.mubr.msk.f32.vlgmr.msra.gmra.mxu1 %vm56_vm0, %v26_v14  ;;  %280 = vmatprep.subr.mxu0 %v3413_v15  ;;  %v3516_v31 = vld [vmem:[%s4669_s3 + $0x130] sm:$0xff]  ;;  %v3522_v32 = vld [vmem:[%s4669_s3 + $0xd8] sm:$0xff]  ;;  %v3529_v33 = vld [vmem:[%s4669_s3 + $0xc8] sm:$0xff] }
   0xc   :  { %281 = vmatpush1.msra.mxu0 %v3418_v16  ;;  %133 = vmatprep.mubr.f32.mxu0 %v4675_v3  ;;  %v3535_v34 = vld [vmem:[%s4669_s3 + $0x118] sm:$0xff]  ;;  %v3541_v35 = vld [vmem:[%s4669_s3 + $0xc0] sm:$0xff]  ;;  %v3548_v36 = vld [vmem:[%s4669_s3 + $0xb0] sm:$0xff] }
   0xd   :  { %282 = vmatprep.subr.mxu0 %v3425_v17  ;;  %2841 = vmatprep.subr.mxu1 %v4675_v3  ;;  %v3554_v37 = vld [vmem:[%s4669_s3 + $0x100] sm:$0xff]  ;;  %v3560_v38 = vld [vmem:[%s4669_s3 + $0xa8] sm:$0xff]  ;;  %v3567_v39 = vld [vmem:[%s4669_s3 + $0x98] sm:$0xff] }
   0xe   :  { %283 = vmatpush1.msra.mxu0 %v3432_v18  ;;  %2873 = vmatprep.mubr.msk.f32.mxu1 %vm3334_vm1, %v4675_v3  ;;  %v3573_v40 = vld [vmem:[%s4669_s3 + $0xe8] sm:$0xff]  ;;  %v3579_v41 = vld [vmem:[%s4669_s3 + $0x90] sm:$0xff]  ;;  %v3586_v42 = vld [vmem:[%s4669_s3 + $0x80] sm:$0xff] }
   0xf   :  { %284 = vmatprep.subr.mxu0 %v3438_v19  ;;  %2651 = vmatmul.mubr.msk.f32.gmra.mxu0 %vm56_vm0, %v26_v14  ;;  %v3592_v43 = vld [vmem:[%s4669_s3 + $0xd0] sm:$0xff]  ;;  %v3598_v44 = vld [vmem:[%s4669_s3 + $0x78] sm:$0xff]  ;;  %v3605_v45 = vld [vmem:[%s4669_s3 + $0x68] sm:$0xff] }
  0x10   :  { %285 = vmatpush1.msra.mxu0 %v3445_v20  ;;  %344 = vmatprep.mubr.f32.mxu0 %v4675_v3  ;;  %v3611_v46 = vld [vmem:[%s4669_s3 + $0xb8] sm:$0xff]  ;;  %v3617_v47 = vld [vmem:[%s4669_s3 + $0x60] sm:$0xff]  ;;  %v3624_v48 = vld [vmem:[%s4669_s3 + $0x50] sm:$0xff] }
  0x11   :  { %286 = vmatprep.subr.mxu0 %v3452_v21  ;;  %2842 = vmatpush3.msra.mxu1 %v3473_v24  ;;  %v3630_v49 = vld [vmem:[%s4669_s3 + $0xa0] sm:$0xff]  ;;  %v3636_v50 = vld [vmem:[%s4669_s3 + $0x48] sm:$0xff]  ;;  %v3643_v51 = vld [vmem:[%s4669_s3 + $0x38] sm:$0xff] }
  0x12   :  { %287 = vmatpush1.msra.mxu0 %v3460_v22  ;;  %2843 = vmatprep.subr.mxu1 %v4675_v3  ;;  %4716 = vst [vmem:[#allocation5_spill] sm:$0xff] %v3643_v51  ;;  %v3649_v52 = vld [vmem:[%s4669_s3 + $0x88] sm:$0xff]  ;;  %v3655_v53 = vld [vmem:[%s4669_s3 + $0x30] sm:$0xff]  ;;  %v3662_v54 = vld [vmem:[%s4669_s3 + $0x20] sm:$0xff] }
  0x13   :  { %288 = vmatprep.subr.mxu0 %v3467_v23  ;;  %2844 = vmatpush3.msra.mxu1 %v3485_v26  ;;  %4717 = vst [vmem:[#allocation6_spill] sm:$0xff] %v3655_v53  ;;  %4718 = vst [vmem:[#allocation7_spill] sm:$0xff] %v3662_v54  ;;  %v3668_v55 = vld [vmem:[%s4669_s3 + $0x70] sm:$0xff]  ;;  %v3674_v56 = vld [vmem:[%s4669_s3 + $0x18] sm:$0xff] }
  0x14   :  { %289 = vmatpush1.msra.mxu0 %v3479_v25  ;;  %2845 = vmatprep.subr.mxu1 %v4675_v3  ;;  %4719 = vst [vmem:[#allocation8_spill] sm:$0xff] %v3674_v56  ;;  %v3681_v57 = vld [vmem:[%s4669_s3 + $0x8] sm:$0xff]  ;;  %v3687_v58 = vld [vmem:[%s4669_s3 + $0x58] sm:$0xff]  ;;  %v3693_v59 = vld [vmem:[%s4669_s3] sm:$0xff] }
  0x15   :  { %290 = vmatprep.subr.mxu0 %v3491_v27  ;;  %2846 = vmatpush3.msra.mxu1 %v3497_v28  ;;  %4720 = vst [vmem:[#allocation9_spill] sm:$0xff] %v3681_v57  ;;  %4721 = vst [vmem:[#allocation10_spill] sm:$0xff] %v3693_v59  ;;  %v3697_v60 = vld [vmem:[#allocation3] sm:$0x3]  ;;  %v3703_v61 = vld [vmem:[%s4669_s3 + $0x40] sm:$0xff] }
  0x16   :  { %291 = vmatpush1.msra.mxu0 %v3503_v29  ;;  %2847 = vmatprep.subr.mxu1 %v4675_v3  ;;  %4722 = vst [vmem:[#allocation11_spill] sm:$0xff] %v3703_v61  ;;  %v3712_v62 = vld [vmem:[%s4669_s3 + $0x28] sm:$0xff]  ;;  %v3720_v63 = vld [vmem:[%s4669_s3 + $0x10] sm:$0xff]  ;;  %v39_v4 = vld [vmem:[%s4670_s2] sm:$0x7] }
  0x17   :  { %292 = vmatprep.subr.mxu0 %v3510_v30  ;;  %2848 = vmatpush3.msra.mxu1 %v3516_v31  ;;  %4723 = vst [vmem:[#allocation12_spill] sm:$0xff] %v3712_v62  ;;  %4724 = vst [vmem:[#allocation13_spill] sm:$0xff] %v3720_v63  ;;  %v44_v7 = vrot.slane %v39_v4, %v43_v2  ;;  %v48_v8 = vrot.slane %v39_v4, %v47_v5  ;;  %v3335_v2 = vmov 1966171168  }
  0x18   :  { %293 = vmatpush1.msra.mxu0 %v3522_v32  ;;  %2849 = vmatprep.subr.mxu1 %v4675_v3  ;;  %v52_v10 = vrot.slane %v39_v4, %v51_v6  ;;  %v423_v5 = vunpack.c.l.s4 %v3335_v2 }
  0x19   :  { %294 = vmatprep.subr.mxu0 %v3529_v33  ;;  %2850 = vmatpush3.msra.mxu1 %v3535_v34 }
  0x1a   :  { %295 = vmatpush1.msra.mxu0 %v3541_v35  ;;  %2851 = vmatprep.subr.mxu1 %v4675_v3  ;;  %v424_v4 = vunpack.c.0.s8 %v423_v5 }
  0x1b   :  { %296 = vmatprep.subr.mxu0 %v3548_v36  ;;  %2852 = vmatpush3.msra.mxu1 %v3554_v37 }
  0x1c   :  { %297 = vmatpush1.msra.mxu0 %v3560_v38  ;;  %2853 = vmatprep.subr.mxu1 %v4675_v3  ;;  %v3798_v6 = vsub.s32 %v424_v4, %v42_v1 }
  0x1d   :  { %298 = vmatprep.subr.mxu0 %v3567_v39  ;;  %2854 = vmatpush3.msra.mxu1 %v3573_v40 }
  0x1e   :  { %299 = vmatpush1.msra.mxu0 %v3579_v41  ;;  %2855 = vmatprep.subr.mxu1 %v4675_v3 }
  0x1f   :  { %300 = vmatprep.subr.mxu0 %v3586_v42  ;;  %2856 = vmatpush3.msra.mxu1 %v3592_v43 }
  0x20   :  { %301 = vmatpush1.msra.mxu0 %v3598_v44  ;;  %2857 = vmatprep.subr.mxu1 %v4675_v3 }
  0x21   :  { %302 = vmatprep.subr.mxu0 %v3605_v45  ;;  %2858 = vmatpush3.msra.mxu1 %v3611_v46 }
  0x22   :  { %303 = vmatpush1.msra.mxu0 %v3617_v47  ;;  %2859 = vmatprep.subr.mxu1 %v4675_v3 }
  0x23   :  { %304 = vmatprep.subr.mxu0 %v3624_v48  ;;  %2860 = vmatpush3.msra.mxu1 %v3630_v49 }
  0x24   :  { %305 = vmatpush1.msra.mxu0 %v3636_v50  ;;  %2861 = vmatprep.subr.mxu1 %v4675_v3 }
  0x25   :  { %306 = vmatprep.subr.mxu0 %v3643_v51  ;;  %2862 = vmatpush3.msra.mxu1 %v3649_v52 }
  0x26   :  { %307 = vmatpush1.msra.mxu0 %v3655_v53  ;;  %2863 = vmatprep.subr.mxu1 %v4675_v3 }
  0x27   :  { %308 = vmatprep.subr.mxu0 %v3662_v54  ;;  %2864 = vmatpush3.msra.mxu1 %v3668_v55 }
  0x28   :  { %309 = vmatpush1.msra.mxu0 %v3674_v56  ;;  %2865 = vmatprep.subr.mxu1 %v4675_v3 }
  0x29   :  { %310 = vmatprep.subr.mxu0 %v3681_v57  ;;  %2866 = vmatpush3.msra.mxu1 %v3687_v58 }
  0x2a   :  { %311 = vmatpush1.msra.mxu0 %v3693_v59  ;;  %2867 = vmatprep.subr.mxu1 %v4675_v3 }
  0x2b   :  { %345 = vmatmul.mubr.f32.vlgmr.msra.gmra.mxu0 %v3697_v60  ;;  %2868 = vmatpush3.msra.mxu1 %v3703_v61 }
  0x2c   :  { %2869 = vmatprep.subr.mxu1 %v4675_v3  ;;  %598 = vmatprep.subr.mxu0 %v3413_v15 }
  0x2d   :  { %2870 = vmatpush3.msra.mxu1 %v3712_v62  ;;  %599 = vmatpush1.msra.mxu0 %v3418_v16 }
  0x2e   :  { %2871 = vmatprep.subr.mxu1 %v4675_v3  ;;  %600 = vmatprep.subr.mxu0 %v3425_v17 }
  0x2f   :  { %2872 = vmatpush3.msra.mxu1 %v3720_v63  ;;  %601 = vmatpush1.msra.mxu0 %v3432_v18 }
  0x30   :  { %2874 = vmatmul.mubr.f32.vlgmr.msra.gmra.mxu1 %v3697_v60  ;;  %2876 = vmatprep.subr.mxu1 %v4675_v3 }
  0x31   :  { %2877 = vmatpush3.msra.mxu1 %v3473_v24  ;;  %602 = vmatprep.subr.mxu0 %v3438_v19 }
  0x32   :  { %2878 = vmatprep.subr.mxu1 %v4675_v3  ;;  %603 = vmatpush1.msra.mxu0 %v3445_v20 }
  0x33   :  { %2879 = vmatpush3.msra.mxu1 %v3485_v26  ;;  %604 = vmatprep.subr.mxu0 %v3452_v21 }
  0x34   :  { %2880 = vmatprep.subr.mxu1 %v4675_v3  ;;  %605 = vmatpush1.msra.mxu0 %v3460_v22 }
  0x35   :  { %2881 = vmatpush3.msra.mxu1 %v3497_v28  ;;  %606 = vmatprep.subr.mxu0 %v3467_v23 }
  0x36   :  { %2882 = vmatprep.subr.mxu1 %v4675_v3  ;;  %607 = vmatpush1.msra.mxu0 %v3479_v25 }
  0x37   :  { %2883 = vmatpush3.msra.mxu1 %v3516_v31  ;;  %608 = vmatprep.subr.mxu0 %v3491_v27 }
  0x38   :  { %2884 = vmatprep.subr.mxu1 %v4675_v3  ;;  %609 = vmatpush1.msra.mxu0 %v3503_v29 }
  0x39   :  { %2885 = vmatpush3.msra.mxu1 %v3535_v34  ;;  %610 = vmatprep.subr.mxu0 %v3510_v30 }
  0x3a   :  { %2886 = vmatprep.subr.mxu1 %v4675_v3  ;;  %611 = vmatpush1.msra.mxu0 %v3522_v32 }
  0x3b   :  { %2887 = vmatpush3.msra.mxu1 %v3554_v37  ;;  %612 = vmatprep.subr.mxu0 %v3529_v33 }
  0x3c   :  { %2888 = vmatprep.subr.mxu1 %v4675_v3  ;;  %613 = vmatpush1.msra.mxu0 %v3541_v35 }
  0x3d   :  { %2889 = vmatpush3.msra.mxu1 %v3573_v40  ;;  %614 = vmatprep.subr.mxu0 %v3548_v36 }
  0x3e   :  { %2890 = vmatprep.subr.mxu1 %v4675_v3  ;;  %615 = vmatpush1.msra.mxu0 %v3560_v38 }
  0x3f   :  { %2891 = vmatpush3.msra.mxu1 %v3592_v43  ;;  %616 = vmatprep.subr.mxu0 %v3567_v39 }
  0x40   :  { %2892 = vmatprep.subr.mxu1 %v4675_v3  ;;  %617 = vmatpush1.msra.mxu0 %v3579_v41 }
  0x41   :  { %2893 = vmatpush3.msra.mxu1 %v3611_v46  ;;  %618 = vmatprep.subr.mxu0 %v3586_v42 }
  0x42   :  { %2894 = vmatprep.subr.mxu1 %v4675_v3  ;;  %619 = vmatpush1.msra.mxu0 %v3598_v44 }
  0x43   :  { %2895 = vmatpush3.msra.mxu1 %v3630_v49  ;;  %620 = vmatprep.subr.mxu0 %v3605_v45 }
  0x44   :  { %2896 = vmatprep.subr.mxu1 %v4675_v3  ;;  %621 = vmatpush1.msra.mxu0 %v3617_v47 }
  0x45   :  { %2897 = vmatpush3.msra.mxu1 %v3649_v52  ;;  %622 = vmatprep.subr.mxu0 %v3624_v48 }
  0x46   :  { %2898 = vmatprep.subr.mxu1 %v4675_v3  ;;  %623 = vmatpush1.msra.mxu0 %v3636_v50 }
  0x47   :  { %2899 = vmatpush3.msra.mxu1 %v3668_v55  ;;  %624 = vmatprep.subr.mxu0 %v3643_v51 }
  0x48   :  { %2900 = vmatprep.subr.mxu1 %v4675_v3  ;;  %625 = vmatpush1.msra.mxu0 %v3655_v53 }
  0x49   :  { %2901 = vmatpush3.msra.mxu1 %v3687_v58  ;;  %626 = vmatprep.subr.mxu0 %v3662_v54 }
  0x4a   :  { %2902 = vmatprep.subr.mxu1 %v4675_v3  ;;  %627 = vmatpush1.msra.mxu0 %v3674_v56 }
  0x4b   :  { %2903 = vmatpush3.msra.mxu1 %v3703_v61  ;;  %628 = vmatprep.subr.mxu0 %v3681_v57 }
  0x4c   :  { %2904 = vmatprep.subr.mxu1 %v4675_v3  ;;  %629 = vmatpush1.msra.mxu0 %v3693_v59 }
  0x4d   :  { %2905 = vmatpush3.msra.mxu1 %v3712_v62  ;;  %662 = vmatprep.mubr.f32.mxu0 %v4675_v3 }
  0x4e   :  { %2906 = vmatprep.subr.mxu1 %v4675_v3  ;;  %2908 = vmatprep.mubr.msk.f32.mxu1 %vm3334_vm1, %v4675_v3 }
  0x4f   :  { %2907 = vmatpush3.msra.mxu1 %v3720_v63  ;;  %891 = vmatprep.subr.mxu0 %v3413_v15 }
  0x50   :  { %2911 = vmatprep.subr.mxu1 %v4675_v3 }
  0xca   :  { %v129_v9 = vpop.f32.mrf.mxu0 }
  0xcb   :  { %v130_v11 = vadd.f32 %v129_v9, %v44_v7  ;;  %v2840_v12 = vpop.f32.mrf.mxu1 }
  0xcc   :  { %v212_v13 = vadd.f32 %v2840_v12, %v52_v10  ;;  %v131_v14 = vpop.f32.mrf.mxu0 }
  0xcd   :  { %215 = vst [vmem:[#allocation2] sm:$0xff] %v130_v11  ;;  %v132_v15 = vadd.f32 %v131_v14, %v48_v8  ;;  %v206_v3 = vpop.f32.mrf.mxu1 }
  0xce   :  { %220 = vst [vmem:[#allocation2 + $0x28] sm:$0xff] %v212_v13  ;;  %v207_v0 = vadd.f32 %v206_v3, %v52_v10 }
  0xcf   :  { %216 = vst [vmem:[#allocation2 + $0x8] sm:$0xff] %v132_v15  ;;  %v135_v63 = vpop.f32.mrf.mxu0 }
  0xd0   :  { %217 = vst [vmem:[#allocation2 + $0x10] sm:$0xff] %v207_v0  ;;  %v136_v59 = vadd.f32 %v135_v63, %v44_v7 }
  0xd1   :  { %v137_v57 = vpop.f32.mrf.mxu0 }
  0xd2   :  { %218 = vst [vmem:[#allocation2 + $0x18] sm:$0xff] %v136_v59  ;;  %v138_v62 = vadd.f32 %v137_v57, %v48_v8 }
  0xd4   :  { %219 = vst [vmem:[#allocation2 + $0x20] sm:$0xff] %v138_v62 }
  0xd7   :  { %v277_v10 = vld [vmem:[#allocation2] ss:$8 sm:$0x7] }
  0xd8   :  { %v462_v5 = vrot.slane %v277_v10, 1 }
  0xdb   :  { %v279_v7 = vld [vmem:[#allocation2 + $0x18] ss:$8 sm:$0x7] }
  0xeb   :  { %v346_v9 = vpop.f32.mrf.mxu0 }
  0xec   :  { %v428_v11 = vrot.slane %v346_v9, %v3798_v6  ;;  %v463_v9 = vrot.slane %v279_v7, 1 }
  0xed   :  { %v348_v12 = vpop.f32.mrf.mxu0 }
  0xee   :  { %v429_v14 = vcombine.high %v428_v11, %v428_v11  ;;  %v436_v3 = vrot.slane %v428_v11, %v3798_v6  ;;  %v473_v15 = vrot.slane %v348_v12, %v3798_v6 }
  0xf0   :  { %v443_v63 = vrot.slane %v429_v14, %v3798_v6  ;;  %v446_v59 = vadd.f32 %v436_v3, %v277_v10  ;;  %v474_v57 = vcombine.high %v473_v15, %v473_v15  ;;  %v417_v62 = vpop.f32.mrf.mxu1  ;;  %v481_v1 = vrot.slane %v473_v15, %v3798_v6 }
  0xf2   :  { %v447_v8 = vadd.f32 %v443_v63, %v279_v7  ;;  %v2655_v13 = vmul.f32 -1.442695, %v446_v59  ;;  %v2875_v0 = vpop.f32.mrf.mxu1  ;;  %v488_v4 = vrot.slane %v474_v57, %v3798_v6  ;;  %v491_v11 = vadd.f32 %v481_v1, %v462_v5  ;;  %v3809_v63 = vld [vmem:[%s4671_s4] ss:$0 sm:$0xff] }
  0xf3   :  { %4725 = vst [vmem:[#allocation14_spill] sm:$0xff] %v3809_v63  ;;  %v505_v57 = vadd.f32 %v3809_v63, %v417_v62 }
  0xf4   :  { %3124 = vpow2.f32 %v2655_v13  ;;  %v2656_v2 = vmul.f32 -1.442695, %v447_v8  ;;  %v492_v12 = vadd.f32 %v488_v4, %v463_v9  ;;  %v2657_v56 = vmul.f32 -1.442695, %v491_v11 }
  0xf5   :  { %v513_v13 = vrot.slane %v505_v57, %v3798_v6  ;;  %v552_v57 = vrot.slane %v3697_v60, %v3798_v6 }
  0xf6   :  { %3126 = vpow2.f32 %v2656_v2  ;;  %v2658_v14 = vmul.f32 -1.442695, %v492_v12  ;;  %v533_v12 = vrot.slane %v277_v10, 2 }
  0xf7   :  { %3128 = vpow2.f32 %v2657_v56  ;;  %v514_v0 = vcombine.high %v513_v13, %v513_v13  ;;  %v521_v5 = vrot.slane %v513_v13, %v3798_v6 }
  0xf8   :  { %3130 = vpow2.f32 %v2658_v14 }
  0xf9   :  { %v528_v9 = vrot.slane %v514_v0, %v3798_v6 }
 0x101   :  { %v3125_v3 = vpop.eup %3124 }
 0x102   :  { %v454_v15 = vadd.f32 1.0, %v3125_v3 }
 0x103   :  { %v3127_v59 = vpop.eup %3126 }
 0x104   :  { %v455_v8 = vadd.f32 1.0, %v3127_v59  ;;  %3132 = vrcp.f32 %v454_v15  ;;  %v3129_v1 = vpop.eup %3128  ;;  %v534_v15 = vrot.slane %v279_v7, 2 }
 0x105   :  { %v3131_v2 = vpop.eup %3130  ;;  %v499_v56 = vadd.f32 1.0, %v3129_v1  ;;  %v553_v1 = vcombine.high %v552_v57, %v552_v57 }
 0x106   :  { %3134 = vrcp.f32 %v455_v8  ;;  %v500_v4 = vadd.f32 1.0, %v3131_v2  ;;  %v560_v2 = vrot.slane %v552_v57, %v3798_v6  ;;  %v4727_v57 = vld [vmem:[#allocation8_spill] sm:$0xff] }
 0x107   :  { %3136 = vrcp.f32 %v499_v56  ;;  %v567_v10 = vrot.slane %v553_v1, %v3798_v6  ;;  %v4728_v1 = vld [vmem:[#allocation12_spill] sm:$0xff] }
 0x108   :  { %3138 = vrcp.f32 %v500_v4 }
 0x111   :  { %v3133_v11 = vpop.eup %3132 }
 0x112   :  { %v531_v14 = vmul.f32 %v3133_v11, %v521_v5 }
 0x113   :  { %v3135_v3 = vpop.eup %3134 }
 0x114   :  { %v532_v62 = vmul.f32 %v3135_v3, %v528_v9  ;;  %v537_v59 = vadd.f32 %v533_v12, %v531_v14  ;;  %v3137_v13 = vpop.eup %3136 }
 0x115   :  { %v3139_v0 = vpop.eup %3138  ;;  %v541_v56 = vsub.f32 1.0, %v3137_v13  ;;  %v570_v4 = vmul.f32 %v3137_v13, %v560_v2  ;;  %v4729_v13 = vld [vmem:[#allocation9_spill] sm:$0xff]  ;;  %v4730_v2 = vld [vmem:[#allocation10_spill] sm:$0xff] }
 0x116   :  { %v538_v8 = vadd.f32 %v534_v15, %v532_v62  ;;  %3140 = vtanh.f32 %v537_v59  ;;  %v542_v11 = vsub.f32 1.0, %v3139_v0  ;;  %v571_v14 = vmul.f32 %v3139_v0, %v567_v10  ;;  %v4731_v0 = vld [vmem:[#allocation13_spill] sm:$0xff]  ;;  %v4732_v10 = vld [vmem:[#allocation4_spill] sm:$0xff] }
 0x118   :  { %3142 = vtanh.f32 %v538_v8  ;;  %v4726_v8 = vmov 0.0  }
 0x123   :  { %v3141_v5 = vpop.eup %3140 }
 0x124   :  { %v543_v7 = vmul.f32 %v3141_v5, %v541_v56 }
 0x125   :  { %v3143_v9 = vpop.eup %3142 }
 0x126   :  { %v544_v12 = vmul.f32 %v3143_v9, %v542_v11  ;;  %v3819_v3 = vadd.f32 %v570_v4, %v543_v7 }
 0x128   :  { %v3821_v15 = vadd.f32 %v571_v14, %v544_v12  ;;  %574 = vst [vmem:[%s4672_s5] sm:$0x1] %v3819_v3 }
 0x12a   :  { %575 = vst [vmem:[%s4672_s5 + $0x8] sm:$0x1] %v3821_v15  ;;  %v582_v60 = vcombine.low %v3819_v3, %v3821_v15 }
 0x12c   :  { %v589_v62 = vrot.slane %v582_v60, %v3798_v6  ;;  %v577_v60 = vld [vmem:[#allocation2 + $0x1] ss:$8 sm:$0x7] }
 0x12e   :  { %v596_v59 = vrot.slane %v589_v62, %v3798_v6 }
 0x130   :  { %663 = vmatmul.mubr.f32.vlgmr.msra.gmra.mxu0 %v596_v59  ;;  %2909 = vmatmul.mubr.f32.vlgmr.msra.gmra.mxu1 %v596_v59 }
 0x131   :  { %892 = vmatpush1.msra.mxu0 %v3418_v16  ;;  %2912 = vmatpush3.msra.mxu1 %v3473_v24 }
 0x132   :  { %893 = vmatprep.subr.mxu0 %v3425_v17  ;;  %2913 = vmatprep.subr.mxu1 %v4726_v8 }
 0x133   :  { %894 = vmatpush1.msra.mxu0 %v3432_v18  ;;  %2914 = vmatpush3.msra.mxu1 %v3485_v26 }
 0x134   :  { %895 = vmatprep.subr.mxu0 %v3438_v19  ;;  %2915 = vmatprep.subr.mxu1 %v4726_v8 }
 0x135   :  { %896 = vmatpush1.msra.mxu0 %v3445_v20  ;;  %2916 = vmatpush3.msra.mxu1 %v3497_v28 }
 0x136   :  { %897 = vmatprep.subr.mxu0 %v3452_v21  ;;  %2917 = vmatprep.subr.mxu1 %v4726_v8 }
 0x137   :  { %898 = vmatpush1.msra.mxu0 %v3460_v22  ;;  %2918 = vmatpush3.msra.mxu1 %v3516_v31 }
 0x138   :  { %899 = vmatprep.subr.mxu0 %v3467_v23  ;;  %2919 = vmatprep.subr.mxu1 %v4726_v8 }
 0x139   :  { %900 = vmatpush1.msra.mxu0 %v3479_v25  ;;  %2920 = vmatpush3.msra.mxu1 %v3535_v34 }
 0x13a   :  { %901 = vmatprep.subr.mxu0 %v3491_v27  ;;  %2921 = vmatprep.subr.mxu1 %v4726_v8 }
 0x13b   :  { %902 = vmatpush1.msra.mxu0 %v3503_v29  ;;  %2922 = vmatpush3.msra.mxu1 %v3554_v37 }
 0x13c   :  { %903 = vmatprep.subr.mxu0 %v3510_v30  ;;  %2923 = vmatprep.subr.mxu1 %v4726_v8 }
 0x13d   :  { %904 = vmatpush1.msra.mxu0 %v3522_v32  ;;  %2924 = vmatpush3.msra.mxu1 %v3573_v40 }
 0x13e   :  { %905 = vmatprep.subr.mxu0 %v3529_v33  ;;  %2925 = vmatprep.subr.mxu1 %v4726_v8 }
 0x13f   :  { %906 = vmatpush1.msra.mxu0 %v3541_v35  ;;  %2926 = vmatpush3.msra.mxu1 %v3592_v43 }
 0x140   :  { %907 = vmatprep.subr.mxu0 %v3548_v36  ;;  %2927 = vmatprep.subr.mxu1 %v4726_v8 }
 0x141   :  { %908 = vmatpush1.msra.mxu0 %v3560_v38  ;;  %2928 = vmatpush3.msra.mxu1 %v3611_v46 }
 0x142   :  { %909 = vmatprep.subr.mxu0 %v3567_v39  ;;  %2929 = vmatprep.subr.mxu1 %v4726_v8 }
 0x143   :  { %910 = vmatpush1.msra.mxu0 %v3579_v41  ;;  %2930 = vmatpush3.msra.mxu1 %v3630_v49 }
 0x144   :  { %911 = vmatprep.subr.mxu0 %v3586_v42  ;;  %2931 = vmatprep.subr.mxu1 %v4726_v8 }
 0x145   :  { %912 = vmatpush1.msra.mxu0 %v3598_v44  ;;  %2932 = vmatpush3.msra.mxu1 %v3649_v52 }
 0x146   :  { %913 = vmatprep.subr.mxu0 %v3605_v45  ;;  %2933 = vmatprep.subr.mxu1 %v4726_v8 }
 0x147   :  { %914 = vmatpush1.msra.mxu0 %v3617_v47  ;;  %2934 = vmatpush3.msra.mxu1 %v3668_v55 }
 0x148   :  { %915 = vmatprep.subr.mxu0 %v3624_v48  ;;  %2935 = vmatprep.subr.mxu1 %v4726_v8 }
 0x149   :  { %916 = vmatpush1.msra.mxu0 %v3636_v50  ;;  %2936 = vmatpush3.msra.mxu1 %v3687_v58 }
 0x14a   :  { %917 = vmatprep.subr.mxu0 %v3643_v51  ;;  %2937 = vmatprep.subr.mxu1 %v4726_v8 }
 0x14b   :  { %918 = vmatpush1.msra.mxu0 %v3655_v53  ;;  %2938 = vmatpush3.msra.mxu1 %v3703_v61 }
 0x14c   :  { %919 = vmatprep.subr.mxu0 %v3662_v54  ;;  %2939 = vmatprep.subr.mxu1 %v4726_v8 }
 0x14d   :  { %920 = vmatpush1.msra.mxu0 %v4727_v57  ;;  %2940 = vmatpush3.msra.mxu1 %v4728_v1 }
 0x14e   :  { %921 = vmatprep.subr.mxu0 %v4729_v13  ;;  %2941 = vmatprep.subr.mxu1 %v4726_v8 }
 0x14f   :  { %922 = vmatpush1.msra.mxu0 %v4730_v2  ;;  %955 = vmatprep.mubr.f32.mxu0 %v4726_v8 }
 0x150   :  { %2942 = vmatpush3.msra.mxu1 %v4731_v0  ;;  %2943 = vmatprep.mubr.msk.f32.mxu1 %vm3334_vm1, %v4726_v8  ;;  %v579_v0 = vld [vmem:[#allocation2 + $0x19] ss:$8 sm:$0x7] }
 0x151   :  { %1184 = vmatprep.subr.mxu0 %v4732_v10  ;;  %2946 = vmatprep.subr.mxu1 %v4726_v8  ;;  %v781_v54 = vrot.slane %v579_v0, 1 }
 0x1f0   :  { %v664_v56 = vpop.f32.mrf.mxu0  ;;  %v735_v5 = vpop.f32.mrf.mxu1 }
 0x1f1   :  { %v746_v11 = vrot.slane %v664_v56, %v3798_v6  ;;  %v780_v56 = vrot.slane %v577_v60, 1 }
 0x1f2   :  { %v666_v7 = vpop.f32.mrf.mxu0  ;;  %v2910_v4 = vpop.f32.mrf.mxu1 }
 0x1f3   :  { %v747_v9 = vcombine.high %v746_v11, %v746_v11  ;;  %v754_v12 = vrot.slane %v746_v11, %v3798_v6  ;;  %v791_v14 = vrot.slane %v666_v7, %v3798_v6 }
 0x1f5   :  { %v761_v62 = vrot.slane %v747_v9, %v3798_v6  ;;  %v764_v59 = vadd.f32 %v754_v12, %v577_v60  ;;  %v792_v2 = vcombine.high %v791_v14, %v791_v14  ;;  %v799_v1 = vrot.slane %v791_v14, %v3798_v6 }
 0x1f7   :  { %v765_v10 = vadd.f32 %v761_v62, %v579_v0  ;;  %v2659_v13 = vmul.f32 -1.442695, %v764_v59  ;;  %v806_v4 = vrot.slane %v792_v2, %v3798_v6  ;;  %v809_v11 = vadd.f32 %v799_v1, %v780_v56 }
 0x1f8   :  { %v851_v56 = vrot.slane %v577_v60, 2 }
 0x1f9   :  { %3144 = vpow2.f32 %v2659_v13  ;;  %v2660_v57 = vmul.f32 -1.442695, %v765_v10  ;;  %v810_v61 = vadd.f32 %v806_v4, %v781_v54  ;;  %v2661_v7 = vmul.f32 -1.442695, %v809_v11 }
 0x1fa   :  { %v823_v13 = vadd.f32 %v3809_v63, %v735_v5  ;;  %v852_v11 = vrot.slane %v579_v0, 2 }
 0x1fb   :  { %3146 = vpow2.f32 %v2660_v57  ;;  %v2662_v53 = vmul.f32 -1.442695, %v810_v61 }
 0x1fc   :  { %3148 = vpow2.f32 %v2661_v7  ;;  %v831_v10 = vrot.slane %v823_v13, %v3798_v6 }
 0x1fd   :  { %3150 = vpow2.f32 %v2662_v53 }
 0x1fe   :  { %v832_v57 = vcombine.high %v831_v10, %v831_v10  ;;  %v839_v54 = vrot.slane %v831_v10, %v3798_v6 }
 0x200   :  { %v846_v53 = vrot.slane %v832_v57, %v3798_v6 }
 0x206   :  { %v3145_v9 = vpop.eup %3144 }
 0x207   :  { %v772_v12 = vadd.f32 1.0, %v3145_v9 }
 0x208   :  { %v3147_v51 = vpop.eup %3146 }
 0x209   :  { %v773_v62 = vadd.f32 1.0, %v3147_v51  ;;  %3152 = vrcp.f32 %v772_v12  ;;  %v3149_v14 = vpop.eup %3148 }
 0x20a   :  { %v3151_v2 = vpop.eup %3150  ;;  %v817_v59 = vadd.f32 1.0, %v3149_v14 }
 0x20b   :  { %3154 = vrcp.f32 %v773_v62  ;;  %v818_v1 = vadd.f32 1.0, %v3151_v2 }
 0x20c   :  { %3156 = vrcp.f32 %v817_v59 }
 0x20d   :  { %3158 = vrcp.f32 %v818_v1  ;;  %v4743_v1 = vld [vmem:[#allocation14_spill] sm:$0xff] }
 0x216   :  { %v3153_v61 = vpop.eup %3152 }
 0x217   :  { %v849_v4 = vmul.f32 %v3153_v61, %v839_v54 }
 0x218   :  { %v3155_v51 = vpop.eup %3154 }
 0x219   :  { %v850_v7 = vmul.f32 %v3155_v51, %v846_v53  ;;  %v855_v9 = vadd.f32 %v851_v56, %v849_v4  ;;  %v3157_v12 = vpop.eup %3156 }
 0x21a   :  { %v3159_v62 = vpop.eup %3158  ;;  %v859_v13 = vsub.f32 1.0, %v3157_v12  ;;  %v863_v60 = vmul.f32 %v3157_v12, %v3819_v3 }
 0x21b   :  { %v856_v5 = vadd.f32 %v852_v11, %v850_v7  ;;  %3160 = vtanh.f32 %v855_v9  ;;  %v860_v10 = vsub.f32 1.0, %v3159_v62  ;;  %v864_v59 = vmul.f32 %v3159_v62, %v3821_v15 }
 0x21d   :  { %3162 = vtanh.f32 %v856_v5 }
 0x228   :  { %v3161_v14 = vpop.eup %3160 }
 0x229   :  { %v861_v2 = vmul.f32 %v3161_v14, %v859_v13 }
 0x22a   :  { %v3163_v63 = vpop.eup %3162 }
 0x22b   :  { %v862_v57 = vmul.f32 %v3163_v63, %v860_v10  ;;  %v3914_v54 = vadd.f32 %v863_v60, %v861_v2 }
 0x22d   :  { %v3916_v0 = vadd.f32 %v864_v59, %v862_v57  ;;  %867 = vst [vmem:[%s4672_s5 + $0x1] sm:$0x1] %v3914_v54 }
 0x22f   :  { %868 = vst [vmem:[%s4672_s5 + $0x9] sm:$0x1] %v3916_v0  ;;  %v875_v3 = vcombine.low %v3914_v54, %v3916_v0 }
 0x231   :  { %v882_v63 = vrot.slane %v875_v3, %v3798_v6 }
 0x233   :  { %v889_v15 = vrot.slane %v882_v63, %v3798_v6 }
 0x235   :  { %956 = vmatmul.mubr.f32.vlgmr.msra.gmra.mxu0 %v889_v15  ;;  %2944 = vmatmul.mubr.f32.vlgmr.msra.gmra.mxu1 %v889_v15 }
 0x236   :  { %1185 = vmatpush1.msra.mxu0 %v3418_v16  ;;  %2947 = vmatpush3.msra.mxu1 %v3473_v24  ;;  %v4733_v16 = vld [vmem:[#allocation5_spill] sm:$0xff] }
 0x237   :  { %1186 = vmatprep.subr.mxu0 %v3425_v17  ;;  %2948 = vmatprep.subr.mxu1 %v4726_v8  ;;  %v4734_v17 = vld [vmem:[#allocation6_spill] sm:$0xff]  ;;  %v4741_v24 = vld [vmem:[#allocation13_spill] sm:$0xff] }
 0x238   :  { %1187 = vmatpush1.msra.mxu0 %v3432_v18  ;;  %2949 = vmatpush3.msra.mxu1 %v3485_v26  ;;  %v4735_v18 = vld [vmem:[#allocation11_spill] sm:$0xff] }
 0x239   :  { %1188 = vmatprep.subr.mxu0 %v3438_v19  ;;  %2950 = vmatprep.subr.mxu1 %v4726_v8  ;;  %v4736_v19 = vld [vmem:[#allocation7_spill] sm:$0xff] }
 0x23a   :  { %1189 = vmatpush1.msra.mxu0 %v3445_v20  ;;  %2951 = vmatpush3.msra.mxu1 %v3497_v28  ;;  %v4737_v20 = vld [vmem:[#allocation8_spill] sm:$0xff] }
 0x23b   :  { %1190 = vmatprep.subr.mxu0 %v3452_v21  ;;  %2952 = vmatprep.subr.mxu1 %v4726_v8  ;;  %v4738_v21 = vld [vmem:[#allocation12_spill] sm:$0xff] }
 0x23c   :  { %1191 = vmatpush1.msra.mxu0 %v3460_v22  ;;  %2953 = vmatpush3.msra.mxu1 %v3516_v31  ;;  %v4739_v22 = vld [vmem:[#allocation9_spill] sm:$0xff] }
 0x23d   :  { %1192 = vmatprep.subr.mxu0 %v3467_v23  ;;  %2954 = vmatprep.subr.mxu1 %v4726_v8  ;;  %v4740_v23 = vld [vmem:[#allocation10_spill] sm:$0xff] }
 0x23e   :  { %1193 = vmatpush1.msra.mxu0 %v3479_v25  ;;  %2955 = vmatpush3.msra.mxu1 %v3535_v34  ;;  %v4742_v25 = vld [vmem:[#allocation4_spill] sm:$0xff] }
 0x23f   :  { %1194 = vmatprep.subr.mxu0 %v3491_v27  ;;  %2956 = vmatprep.subr.mxu1 %v4726_v8  ;;  %v870_v34 = vld [vmem:[#allocation2 + $0x2] ss:$8 sm:$0x7] }
 0x240   :  { %1195 = vmatpush1.msra.mxu0 %v3503_v29  ;;  %2957 = vmatpush3.msra.mxu1 %v3554_v37  ;;  %v872_v37 = vld [vmem:[#allocation2 + $0x1a] ss:$8 sm:$0x7]  ;;  %v1144_v12 = vrot.slane %v870_v34, 2 }
 0x241   :  { %1196 = vmatprep.subr.mxu0 %v3510_v30  ;;  %2958 = vmatprep.subr.mxu1 %v4726_v8  ;;  %v1145_v10 = vrot.slane %v872_v37, 2 }
 0x242   :  { %1197 = vmatpush1.msra.mxu0 %v3522_v32  ;;  %2959 = vmatpush3.msra.mxu1 %v3573_v40 }
 0x243   :  { %1198 = vmatprep.subr.mxu0 %v3529_v33  ;;  %2960 = vmatprep.subr.mxu1 %v4726_v8 }
 0x244   :  { %1199 = vmatpush1.msra.mxu0 %v3541_v35  ;;  %2961 = vmatpush3.msra.mxu1 %v3592_v43  ;;  %v1073_v43 = vrot.slane %v870_v34, 1 }
 0x245   :  { %1200 = vmatprep.subr.mxu0 %v3548_v36  ;;  %2962 = vmatprep.subr.mxu1 %v4726_v8 }
 0x246   :  { %1201 = vmatpush1.msra.mxu0 %v3560_v38  ;;  %2963 = vmatpush3.msra.mxu1 %v3611_v46 }
 0x247   :  { %1202 = vmatprep.subr.mxu0 %v3567_v39  ;;  %2964 = vmatprep.subr.mxu1 %v4726_v8 }
 0x248   :  { %1203 = vmatpush1.msra.mxu0 %v3579_v41  ;;  %2965 = vmatpush3.msra.mxu1 %v3630_v49 }
 0x249   :  { %1204 = vmatprep.subr.mxu0 %v3586_v42  ;;  %2966 = vmatprep.subr.mxu1 %v4726_v8 }
 0x24a   :  { %1205 = vmatpush1.msra.mxu0 %v3598_v44  ;;  %2967 = vmatpush3.msra.mxu1 %v3649_v52 }
 0x24b   :  { %1206 = vmatprep.subr.mxu0 %v3605_v45  ;;  %2968 = vmatprep.subr.mxu1 %v4726_v8  ;;  %v1074_v45 = vrot.slane %v872_v37, 1 }
 0x24c   :  { %1207 = vmatpush1.msra.mxu0 %v3617_v47  ;;  %2969 = vmatpush3.msra.mxu1 %v3668_v55 }
 0x24d   :  { %1208 = vmatprep.subr.mxu0 %v3624_v48  ;;  %2970 = vmatprep.subr.mxu1 %v4726_v8 }
 0x24e   :  { %1209 = vmatpush1.msra.mxu0 %v3636_v50  ;;  %2971 = vmatpush3.msra.mxu1 %v3687_v58 }
 0x24f   :  { %1210 = vmatprep.subr.mxu0 %v4733_v16  ;;  %2972 = vmatprep.subr.mxu1 %v4726_v8 }
 0x250   :  { %1211 = vmatpush1.msra.mxu0 %v4734_v17  ;;  %2973 = vmatpush3.msra.mxu1 %v4735_v18 }
 0x251   :  { %1212 = vmatprep.subr.mxu0 %v4736_v19  ;;  %2974 = vmatprep.subr.mxu1 %v4726_v8 }
 0x252   :  { %1213 = vmatpush1.msra.mxu0 %v4737_v20  ;;  %2975 = vmatpush3.msra.mxu1 %v4738_v21 }
 0x253   :  { %1214 = vmatprep.subr.mxu0 %v4739_v22  ;;  %2976 = vmatprep.subr.mxu1 %v4726_v8 }
 0x254   :  { %1215 = vmatpush1.msra.mxu0 %v4740_v23  ;;  %1248 = vmatprep.mubr.f32.mxu0 %v4726_v8 }
 0x255   :  { %2977 = vmatpush3.msra.mxu1 %v4741_v24  ;;  %2978 = vmatprep.mubr.msk.f32.mxu1 %vm3334_vm1, %v4726_v8 }
 0x256   :  { %1477 = vmatprep.subr.mxu0 %v4742_v25  ;;  %2981 = vmatprep.subr.mxu1 %v4726_v8  ;;  %v4028_v25 = vld [vmem:[%s4669_s3 + $0x168] sm:$0xff] }
 0x2f5   :  { %v957_v26 = vpop.f32.mrf.mxu0  ;;  %v1028_v27 = vpop.f32.mrf.mxu1 }
 0x2f6   :  { %v1039_v28 = vrot.slane %v957_v26, %v3798_v6  ;;  %v1116_v61 = vadd.f32 %v4743_v1, %v1028_v27  ;;  %v4034_v26 = vld [vmem:[%s4669_s3 + $0x178] sm:$0xff] }
 0x2f7   :  { %v959_v29 = vpop.f32.mrf.mxu0  ;;  %v2945_v30 = vpop.f32.mrf.mxu1  ;;  %v4040_v27 = vld [vmem:[%s4669_s3 + $0x158] sm:$0xff] }
 0x2f8   :  { %v1040_v31 = vcombine.high %v1039_v28, %v1039_v28  ;;  %v1047_v32 = vrot.slane %v1039_v28, %v3798_v6  ;;  %v1084_v33 = vrot.slane %v959_v29, %v3798_v6  ;;  %v1124_v56 = vrot.slane %v1116_v61, %v3798_v6  ;;  %v4047_v28 = vld [vmem:[%s4669_s3 + $0x150] sm:$0xff]  ;;  %v4053_v29 = vld [vmem:[%s4669_s3 + $0x160] sm:$0xff] }
 0x2f9   :  { %v4059_v30 = vld [vmem:[%s4669_s3 + $0x140] sm:$0xff] }
 0x2fa   :  { %v1054_v35 = vrot.slane %v1040_v31, %v3798_v6  ;;  %v1057_v36 = vadd.f32 %v1047_v32, %v870_v34  ;;  %v1085_v38 = vcombine.high %v1084_v33, %v1084_v33  ;;  %v1092_v41 = vrot.slane %v1084_v33, %v3798_v6  ;;  %v4066_v31 = vld [vmem:[%s4669_s3 + $0x138] sm:$0xff]  ;;  %v4072_v32 = vld [vmem:[%s4669_s3 + $0x148] sm:$0xff]  ;;  %v4085_v34 = vld [vmem:[%s4669_s3 + $0x120] sm:$0xff] }
 0x2fb   :  { %v1125_v51 = vcombine.high %v1124_v56, %v1124_v56  ;;  %v1132_v7 = vrot.slane %v1124_v56, %v3798_v6  ;;  %v4078_v33 = vld [vmem:[%s4669_s3 + $0x128] sm:$0xff]  ;;  %v4211_v61 = vld [vmem:[%s4669_s3 + $0x80] sm:$0xff]  ;;  %v4218_v56 = vld [vmem:[%s4669_s3 + $0x78] sm:$0xff] }
 0x2fc   :  { %v1058_v39 = vadd.f32 %v1054_v35, %v872_v37  ;;  %v2663_v40 = vmul.f32 -1.442695, %v1057_v36  ;;  %v1099_v44 = vrot.slane %v1085_v38, %v3798_v6  ;;  %v1102_v46 = vadd.f32 %v1092_v41, %v1073_v43  ;;  %v4091_v35 = vld [vmem:[%s4669_s3 + $0x130] sm:$0xff]  ;;  %v4104_v37 = vld [vmem:[%s4669_s3 + $0x108] sm:$0xff]  ;;  %v4110_v38 = vld [vmem:[%s4669_s3 + $0x118] sm:$0xff] }
 0x2fd   :  { %v1139_v62 = vrot.slane %v1125_v51, %v3798_v6  ;;  %v4097_v36 = vld [vmem:[%s4669_s3 + $0x110] sm:$0xff]  ;;  %v4129_v41 = vld [vmem:[%s4669_s3 + $0x100] sm:$0xff]  ;;  %v4142_v43 = vld [vmem:[%s4669_s3 + $0xd8] sm:$0xff] }
 0x2fe   :  { %3164 = vpow2.f32 %v2663_v40  ;;  %v2664_v42 = vmul.f32 -1.442695, %v1058_v39  ;;  %v1103_v47 = vadd.f32 %v1099_v44, %v1074_v45  ;;  %v2665_v48 = vmul.f32 -1.442695, %v1102_v46  ;;  %v4116_v39 = vld [vmem:[%s4669_s3 + $0xf8] sm:$0xff]  ;;  %v4123_v40 = vld [vmem:[%s4669_s3 + $0xf0] sm:$0xff] }
 0x2ff   :  { %v4148_v44 = vld [vmem:[%s4669_s3 + $0xe8] sm:$0xff]  ;;  %v4161_v46 = vld [vmem:[%s4669_s3 + $0xc0] sm:$0xff] }
 0x300   :  { %3166 = vpow2.f32 %v2664_v42  ;;  %v2666_v49 = vmul.f32 -1.442695, %v1103_v47  ;;  %v4135_v42 = vld [vmem:[%s4669_s3 + $0xe0] sm:$0xff]  ;;  %v4154_v45 = vld [vmem:[%s4669_s3 + $0xc8] sm:$0xff]  ;;  %v4167_v47 = vld [vmem:[%s4669_s3 + $0xd0] sm:$0xff] }
 0x301   :  { %3168 = vpow2.f32 %v2665_v48  ;;  %v4173_v48 = vld [vmem:[%s4669_s3 + $0xb0] sm:$0xff]  ;;  %v4237_v51 = vld [vmem:[%s4669_s3 + $0x60] sm:$0xff] }
 0x302   :  { %3170 = vpow2.f32 %v2666_v49  ;;  %v4180_v49 = vld [vmem:[%s4669_s3 + $0xa8] sm:$0xff] }
 0x30b   :  { %v3165_v50 = vpop.eup %3164 }
 0x30c   :  { %v1065_v52 = vadd.f32 1.0, %v3165_v50  ;;  %v4186_v50 = vld [vmem:[%s4669_s3 + $0xb8] sm:$0xff] }
 0x30d   :  { %v3167_v55 = vpop.eup %3166 }
 0x30e   :  { %v1066_v58 = vadd.f32 1.0, %v3167_v55  ;;  %3172 = vrcp.f32 %v1065_v52  ;;  %v3169_v53 = vpop.eup %3168  ;;  %v4192_v52 = vld [vmem:[%s4669_s3 + $0x98] sm:$0xff]  ;;  %v4199_v55 = vld [vmem:[%s4669_s3 + $0x90] sm:$0xff] }
 0x30f   :  { %v3171_v4 = vpop.eup %3170  ;;  %v1110_v11 = vadd.f32 1.0, %v3169_v53  ;;  %v4224_v53 = vld [vmem:[%s4669_s3 + $0x88] sm:$0xff] }
 0x310   :  { %3174 = vrcp.f32 %v1066_v58  ;;  %v1111_v9 = vadd.f32 1.0, %v3171_v4  ;;  %v4205_v58 = vld [vmem:[%s4669_s3 + $0xa0] sm:$0xff]  ;;  %v4230_v4 = vld [vmem:[%s4669_s3 + $0x68] sm:$0xff] }
 0x311   :  { %3176 = vrcp.f32 %v1110_v11  ;;  %v4243_v11 = vld [vmem:[%s4669_s3 + $0x70] sm:$0xff] }
 0x312   :  { %3178 = vrcp.f32 %v1111_v9  ;;  %v4256_v9 = vld [vmem:[%s4669_s3 + $0x48] sm:$0xff] }
 0x31b   :  { %v3173_v5 = vpop.eup %3172 }
 0x31c   :  { %v1142_v13 = vmul.f32 %v3173_v5, %v1132_v7  ;;  %v4249_v7 = vld [vmem:[%s4669_s3 + $0x50] sm:$0xff]  ;;  %v4262_v5 = vld [vmem:[%s4669_s3 + $0x58] sm:$0xff] }
 0x31d   :  { %v3175_v14 = vpop.eup %3174 }
 0x31e   :  { %v1143_v2 = vmul.f32 %v3175_v14, %v1139_v62  ;;  %v1148_v60 = vadd.f32 %v1144_v12, %v1142_v13  ;;  %v3177_v59 = vpop.eup %3176  ;;  %v4268_v12 = vld [vmem:[%s4669_s3 + $0x38] sm:$0xff]  ;;  %v4275_v62 = vld [vmem:[%s4669_s3 + $0x30] sm:$0xff]  ;;  %v4281_v13 = vld [vmem:[%s4669_s3 + $0x40] sm:$0xff] }
 0x31f   :  { %v3179_v3 = vpop.eup %3178  ;;  %v1152_v63 = vsub.f32 1.0, %v3177_v59  ;;  %v1156_v18 = vmul.f32 %v3177_v59, %v3914_v54  ;;  %4744 = vst [vmem:[#allocation5_spill] sm:$0xff] %v4268_v12  ;;  %4745 = vst [vmem:[#allocation6_spill] sm:$0xff] %v4275_v62  ;;  %v4287_v14 = vld [vmem:[%s4669_s3 + $0x20] sm:$0xff]  ;;  %v4320_v59 = vld [vmem:[%s4669_s3 + $0x10] sm:$0xff] }
 0x320   :  { %v1149_v57 = vadd.f32 %v1145_v10, %v1143_v2  ;;  %3180 = vtanh.f32 %v1148_v60  ;;  %v1153_v16 = vsub.f32 1.0, %v3179_v3  ;;  %v1157_v21 = vmul.f32 %v3179_v3, %v3916_v0  ;;  %4746 = vst [vmem:[#allocation11_spill] sm:$0xff] %v4281_v13  ;;  %4747 = vst [vmem:[#allocation7_spill] sm:$0xff] %v4287_v14  ;;  %v4294_v10 = vld [vmem:[%s4669_s3 + $0x18] sm:$0xff]  ;;  %v4300_v2 = vld [vmem:[%s4669_s3 + $0x28] sm:$0xff] }
 0x321   :  { %4748 = vst [vmem:[#allocation8_spill] sm:$0xff] %v4294_v10  ;;  %4749 = vst [vmem:[#allocation12_spill] sm:$0xff] %v4300_v2  ;;  %v4306_v60 = vld [vmem:[%s4669_s3 + $0x8] sm:$0xff]  ;;  %v4328_v3 = vld [vmem:[%s4669_s3 + $0x170] sm:$0xff] }
 0x322   :  { %3182 = vtanh.f32 %v1149_v57  ;;  %4750 = vst [vmem:[#allocation9_spill] sm:$0xff] %v4306_v60  ;;  %v4313_v57 = vld [vmem:[%s4669_s3] sm:$0xff]  ;;  %4752 = vst [vmem:[#allocation13_spill] sm:$0xff] %v4320_v59 }
 0x323   :  { %4751 = vst [vmem:[#allocation10_spill] sm:$0xff] %v4313_v57  ;;  %4753 = vst [vmem:[#allocation4_spill] sm:$0xff] %v4328_v3 }
 0x32d   :  { %v3181_v15 = vpop.eup %3180 }
 0x32e   :  { %v1154_v17 = vmul.f32 %v3181_v15, %v1152_v63 }
 0x32f   :  { %v3183_v19 = vpop.eup %3182 }
 0x330   :  { %v1155_v20 = vmul.f32 %v3183_v19, %v1153_v16  ;;  %v4009_v22 = vadd.f32 %v1156_v18, %v1154_v17 }
 0x332   :  { %v4011_v23 = vadd.f32 %v1157_v21, %v1155_v20  ;;  %1160 = vst [vmem:[%s4672_s5 + $0x2] sm:$0x1] %v4009_v22 }
 0x334   :  { %1161 = vst [vmem:[%s4672_s5 + $0xa] sm:$0x1] %v4011_v23  ;;  %v1168_v54 = vcombine.low %v4009_v22, %v4011_v23 }
 0x336   :  { %v1175_v24 = vrot.slane %v1168_v54, %v3798_v6  ;;  %v1163_v54 = vld [vmem:[#allocation2 + $0x3] ss:$8 sm:$0x7] }
 0x338   :  { %v1182_v0 = vrot.slane %v1175_v24, %v3798_v6 }
 0x33a   :  { %1249 = vmatmul.mubr.f32.vlgmr.msra.gmra.mxu0 %v1182_v0  ;;  %2979 = vmatmul.mubr.f32.vlgmr.msra.gmra.mxu1 %v1182_v0 }
 0x33b   :  { %1478 = vmatpush1.msra.mxu0 %v4028_v25  ;;  %2982 = vmatpush3.msra.mxu1 %v4034_v26 }
 0x33c   :  { %1479 = vmatprep.subr.mxu0 %v4040_v27  ;;  %2983 = vmatprep.subr.mxu1 %v4726_v8 }
 0x33d   :  { %1480 = vmatpush1.msra.mxu0 %v4047_v28  ;;  %2984 = vmatpush3.msra.mxu1 %v4053_v29 }
 0x33e   :  { %1481 = vmatprep.subr.mxu0 %v4059_v30  ;;  %2985 = vmatprep.subr.mxu1 %v4726_v8 }
 0x33f   :  { %1482 = vmatpush1.msra.mxu0 %v4066_v31  ;;  %2986 = vmatpush3.msra.mxu1 %v4072_v32 }
 0x340   :  { %1483 = vmatprep.subr.mxu0 %v4078_v33  ;;  %2987 = vmatprep.subr.mxu1 %v4726_v8 }
 0x341   :  { %1484 = vmatpush1.msra.mxu0 %v4085_v34  ;;  %2988 = vmatpush3.msra.mxu1 %v4091_v35 }
 0x342   :  { %1485 = vmatprep.subr.mxu0 %v4097_v36  ;;  %2989 = vmatprep.subr.mxu1 %v4726_v8 }
 0x343   :  { %1486 = vmatpush1.msra.mxu0 %v4104_v37  ;;  %2990 = vmatpush3.msra.mxu1 %v4110_v38 }
 0x344   :  { %1487 = vmatprep.subr.mxu0 %v4116_v39  ;;  %2991 = vmatprep.subr.mxu1 %v4726_v8 }
 0x345   :  { %1488 = vmatpush1.msra.mxu0 %v4123_v40  ;;  %2992 = vmatpush3.msra.mxu1 %v4129_v41 }
 0x346   :  { %1489 = vmatprep.subr.mxu0 %v4135_v42  ;;  %2993 = vmatprep.subr.mxu1 %v4726_v8 }
 0x347   :  { %1490 = vmatpush1.msra.mxu0 %v4142_v43  ;;  %2994 = vmatpush3.msra.mxu1 %v4148_v44 }
 0x348   :  { %1491 = vmatprep.subr.mxu0 %v4154_v45  ;;  %2995 = vmatprep.subr.mxu1 %v4726_v8 }
 0x349   :  { %1492 = vmatpush1.msra.mxu0 %v4161_v46  ;;  %2996 = vmatpush3.msra.mxu1 %v4167_v47 }
 0x34a   :  { %1493 = vmatprep.subr.mxu0 %v4173_v48  ;;  %2997 = vmatprep.subr.mxu1 %v4726_v8 }
 0x34b   :  { %1494 = vmatpush1.msra.mxu0 %v4180_v49  ;;  %2998 = vmatpush3.msra.mxu1 %v4186_v50 }
 0x34c   :  { %1495 = vmatprep.subr.mxu0 %v4192_v52  ;;  %2999 = vmatprep.subr.mxu1 %v4726_v8 }
 0x34d   :  { %1496 = vmatpush1.msra.mxu0 %v4199_v55  ;;  %3000 = vmatpush3.msra.mxu1 %v4205_v58 }
 0x34e   :  { %1497 = vmatprep.subr.mxu0 %v4211_v61  ;;  %3001 = vmatprep.subr.mxu1 %v4726_v8 }
 0x34f   :  { %1498 = vmatpush1.msra.mxu0 %v4218_v56  ;;  %3002 = vmatpush3.msra.mxu1 %v4224_v53 }
 0x350   :  { %1499 = vmatprep.subr.mxu0 %v4230_v4  ;;  %3003 = vmatprep.subr.mxu1 %v4726_v8 }
 0x351   :  { %1500 = vmatpush1.msra.mxu0 %v4237_v51  ;;  %3004 = vmatpush3.msra.mxu1 %v4243_v11 }
 0x352   :  { %1501 = vmatprep.subr.mxu0 %v4249_v7  ;;  %3005 = vmatprep.subr.mxu1 %v4726_v8 }
 0x353   :  { %1502 = vmatpush1.msra.mxu0 %v4256_v9  ;;  %3006 = vmatpush3.msra.mxu1 %v4262_v5 }
 0x354   :  { %1503 = vmatprep.subr.mxu0 %v4268_v12  ;;  %3007 = vmatprep.subr.mxu1 %v4726_v8 }
 0x355   :  { %1504 = vmatpush1.msra.mxu0 %v4275_v62  ;;  %3008 = vmatpush3.msra.mxu1 %v4281_v13 }
 0x356   :  { %1505 = vmatprep.subr.mxu0 %v4287_v14  ;;  %3009 = vmatprep.subr.mxu1 %v4726_v8 }
 0x357   :  { %1506 = vmatpush1.msra.mxu0 %v4294_v10  ;;  %3010 = vmatpush3.msra.mxu1 %v4300_v2 }
 0x358   :  { %1507 = vmatprep.subr.mxu0 %v4306_v60  ;;  %3011 = vmatprep.subr.mxu1 %v4726_v8 }
 0x359   :  { %1508 = vmatpush1.msra.mxu0 %v4313_v57  ;;  %1541 = vmatprep.mubr.f32.mxu0 %v4726_v8 }
 0x35a   :  { %3012 = vmatpush3.msra.mxu1 %v4320_v59  ;;  %3013 = vmatprep.mubr.msk.f32.mxu1 %vm3334_vm1, %v4726_v8  ;;  %v1165_v59 = vld [vmem:[#allocation2 + $0x1b] ss:$8 sm:$0x7] }
 0x35b   :  { %1770 = vmatprep.subr.mxu0 %v4328_v3  ;;  %3016 = vmatprep.subr.mxu1 %v4726_v8  ;;  %v1367_v14 = vrot.slane %v1165_v59, 1 }
 0x3fa   :  { %v1250_v63 = vpop.f32.mrf.mxu0  ;;  %v1321_v15 = vpop.f32.mrf.mxu1 }
 0x3fb   :  { %v1332_v16 = vrot.slane %v1250_v63, %v3798_v6  ;;  %v1366_v63 = vrot.slane %v1163_v54, 1 }
 0x3fc   :  { %v1252_v17 = vpop.f32.mrf.mxu0  ;;  %v2980_v18 = vpop.f32.mrf.mxu1 }
 0x3fd   :  { %v1333_v19 = vcombine.high %v1332_v16, %v1332_v16  ;;  %v1340_v20 = vrot.slane %v1332_v16, %v3798_v6  ;;  %v1377_v21 = vrot.slane %v1252_v17, %v3798_v6 }
 0x3ff   :  { %v1347_v24 = vrot.slane %v1333_v19, %v3798_v6  ;;  %v1350_v0 = vadd.f32 %v1340_v20, %v1163_v54  ;;  %v1378_v57 = vcombine.high %v1377_v21, %v1377_v21  ;;  %v1385_v2 = vrot.slane %v1377_v21, %v3798_v6 }
 0x401   :  { %v1351_v3 = vadd.f32 %v1347_v24, %v1165_v59  ;;  %v2667_v60 = vmul.f32 -1.442695, %v1350_v0  ;;  %v1392_v18 = vrot.slane %v1378_v57, %v3798_v6  ;;  %v1395_v16 = vadd.f32 %v1385_v2, %v1366_v63 }
 0x402   :  { %v1437_v63 = vrot.slane %v1163_v54, 2 }
 0x403   :  { %3184 = vpow2.f32 %v2667_v60  ;;  %v2668_v10 = vmul.f32 -1.442695, %v1351_v3  ;;  %v1396_v13 = vadd.f32 %v1392_v18, %v1367_v14  ;;  %v2669_v17 = vmul.f32 -1.442695, %v1395_v16 }
 0x404   :  { %v1409_v60 = vadd.f32 %v4743_v1, %v1321_v15  ;;  %v1438_v16 = vrot.slane %v1165_v59, 2 }
 0x405   :  { %3186 = vpow2.f32 %v2668_v10  ;;  %v2670_v62 = vmul.f32 -1.442695, %v1396_v13 }
 0x406   :  { %3188 = vpow2.f32 %v2669_v17  ;;  %v1417_v3 = vrot.slane %v1409_v60, %v3798_v6 }
 0x407   :  { %3190 = vpow2.f32 %v2670_v62 }
 0x408   :  { %v1418_v10 = vcombine.high %v1417_v3, %v1417_v3  ;;  %v1425_v14 = vrot.slane %v1417_v3, %v3798_v6 }
 0x40a   :  { %v1432_v62 = vrot.slane %v1418_v10, %v3798_v6 }
 0x410   :  { %v3185_v19 = vpop.eup %3184 }
 0x411   :  { %v1358_v20 = vadd.f32 1.0, %v3185_v19 }
 0x412   :  { %v3187_v12 = vpop.eup %3186 }
 0x413   :  { %v1359_v24 = vadd.f32 1.0, %v3187_v12  ;;  %3192 = vrcp.f32 %v1358_v20  ;;  %v3189_v21 = vpop.eup %3188 }
 0x414   :  { %v3191_v57 = vpop.eup %3190  ;;  %v1403_v0 = vadd.f32 1.0, %v3189_v21 }
 0x415   :  { %3194 = vrcp.f32 %v1359_v24  ;;  %v1404_v2 = vadd.f32 1.0, %v3191_v57 }
 0x416   :  { %3196 = vrcp.f32 %v1403_v0 }
 0x417   :  { %3198 = vrcp.f32 %v1404_v2 }
 0x420   :  { %v3193_v13 = vpop.eup %3192 }
 0x421   :  { %v1435_v18 = vmul.f32 %v3193_v13, %v1425_v14  ;;  %v4754_v13 = vld [vmem:[#allocation5_spill] sm:$0xff] }
 0x422   :  { %v3195_v12 = vpop.eup %3194 }
 0x423   :  { %v1436_v17 = vmul.f32 %v3195_v12, %v1432_v62  ;;  %v1441_v19 = vadd.f32 %v1437_v63, %v1435_v18  ;;  %v3197_v15 = vpop.eup %3196  ;;  %v4755_v63 = vld [vmem:[#allocation6_spill] sm:$0xff]  ;;  %v4756_v62 = vld [vmem:[#allocation11_spill] sm:$0xff]  ;;  %v4758_v12 = vld [vmem:[#allocation8_spill] sm:$0xff] }
 0x424   :  { %v3199_v20 = vpop.eup %3198  ;;  %v1445_v24 = vsub.f32 1.0, %v3197_v15  ;;  %v1449_v54 = vmul.f32 %v3197_v15, %v4009_v22  ;;  %v4757_v18 = vld [vmem:[#allocation7_spill] sm:$0xff]  ;;  %v4763_v15 = vld [vmem:[#allocation4_spill] sm:$0xff] }
 0x425   :  { %v1442_v1 = vadd.f32 %v1438_v16, %v1436_v17  ;;  %3200 = vtanh.f32 %v1441_v19  ;;  %v1446_v3 = vsub.f32 1.0, %v3199_v20  ;;  %v1450_v0 = vmul.f32 %v3199_v20, %v4011_v23  ;;  %v4759_v16 = vld [vmem:[#allocation12_spill] sm:$0xff]  ;;  %v4760_v17 = vld [vmem:[#allocation9_spill] sm:$0xff]  ;;  %v4761_v19 = vld [vmem:[#allocation10_spill] sm:$0xff] }
 0x427   :  { %3202 = vtanh.f32 %v1442_v1  ;;  %v4762_v1 = vld [vmem:[#allocation13_spill] sm:$0xff] }
 0x432   :  { %v3201_v60 = vpop.eup %3200 }
 0x433   :  { %v1447_v21 = vmul.f32 %v3201_v60, %v1445_v24 }
 0x434   :  { %v3203_v57 = vpop.eup %3202 }
 0x435   :  { %v1448_v10 = vmul.f32 %v3203_v57, %v1446_v3  ;;  %v4344_v14 = vadd.f32 %v1449_v54, %v1447_v21 }
 0x437   :  { %v4346_v59 = vadd.f32 %v1450_v0, %v1448_v10  ;;  %1453 = vst [vmem:[%s4672_s5 + $0x3] sm:$0x1] %v4344_v14  ;;  %v1456_v0 = vld [vmem:[#allocation2 + $0x4] ss:$8 sm:$0x7] }
 0x439   :  { %1454 = vst [vmem:[%s4672_s5 + $0xb] sm:$0x1] %v4346_v59  ;;  %v1461_v22 = vcombine.low %v4344_v14, %v4346_v59 }
 0x43b   :  { %v1468_v2 = vrot.slane %v1461_v22, %v3798_v6 }
 0x43d   :  { %v1475_v23 = vrot.slane %v1468_v2, %v3798_v6 }
 0x43f   :  { %1542 = vmatmul.mubr.f32.vlgmr.msra.gmra.mxu0 %v1475_v23  ;;  %3014 = vmatmul.mubr.f32.vlgmr.msra.gmra.mxu1 %v1475_v23  ;;  %v1458_v23 = vld [vmem:[#allocation2 + $0x1c] ss:$8 sm:$0x7] }
 0x440   :  { %1771 = vmatpush1.msra.mxu0 %v4028_v25  ;;  %3017 = vmatpush3.msra.mxu1 %v4034_v26 }
 0x441   :  { %1772 = vmatprep.subr.mxu0 %v4040_v27  ;;  %3018 = vmatprep.subr.mxu1 %v4726_v8 }
 0x442   :  { %1773 = vmatpush1.msra.mxu0 %v4047_v28  ;;  %3019 = vmatpush3.msra.mxu1 %v4053_v29 }
 0x443   :  { %1774 = vmatprep.subr.mxu0 %v4059_v30  ;;  %3020 = vmatprep.subr.mxu1 %v4726_v8 }
 0x444   :  { %1775 = vmatpush1.msra.mxu0 %v4066_v31  ;;  %3021 = vmatpush3.msra.mxu1 %v4072_v32 }
 0x445   :  { %1776 = vmatprep.subr.mxu0 %v4078_v33  ;;  %3022 = vmatprep.subr.mxu1 %v4726_v8 }
 0x446   :  { %1777 = vmatpush1.msra.mxu0 %v4085_v34  ;;  %3023 = vmatpush3.msra.mxu1 %v4091_v35 }
 0x447   :  { %1778 = vmatprep.subr.mxu0 %v4097_v36  ;;  %3024 = vmatprep.subr.mxu1 %v4726_v8 }
 0x448   :  { %1779 = vmatpush1.msra.mxu0 %v4104_v37  ;;  %3025 = vmatpush3.msra.mxu1 %v4110_v38 }
 0x449   :  { %1780 = vmatprep.subr.mxu0 %v4116_v39  ;;  %3026 = vmatprep.subr.mxu1 %v4726_v8 }
 0x44a   :  { %1781 = vmatpush1.msra.mxu0 %v4123_v40  ;;  %3027 = vmatpush3.msra.mxu1 %v4129_v41 }
 0x44b   :  { %1782 = vmatprep.subr.mxu0 %v4135_v42  ;;  %3028 = vmatprep.subr.mxu1 %v4726_v8 }
 0x44c   :  { %1783 = vmatpush1.msra.mxu0 %v4142_v43  ;;  %3029 = vmatpush3.msra.mxu1 %v4148_v44 }
 0x44d   :  { %1784 = vmatprep.subr.mxu0 %v4154_v45  ;;  %3030 = vmatprep.subr.mxu1 %v4726_v8 }
 0x44e   :  { %1785 = vmatpush1.msra.mxu0 %v4161_v46  ;;  %3031 = vmatpush3.msra.mxu1 %v4167_v47 }
 0x44f   :  { %1786 = vmatprep.subr.mxu0 %v4173_v48  ;;  %3032 = vmatprep.subr.mxu1 %v4726_v8 }
 0x450   :  { %1787 = vmatpush1.msra.mxu0 %v4180_v49  ;;  %3033 = vmatpush3.msra.mxu1 %v4186_v50 }
 0x451   :  { %1788 = vmatprep.subr.mxu0 %v4192_v52  ;;  %3034 = vmatprep.subr.mxu1 %v4726_v8 }
 0x452   :  { %1789 = vmatpush1.msra.mxu0 %v4199_v55  ;;  %3035 = vmatpush3.msra.mxu1 %v4205_v58 }
 0x453   :  { %1790 = vmatprep.subr.mxu0 %v4211_v61  ;;  %3036 = vmatprep.subr.mxu1 %v4726_v8 }
 0x454   :  { %1791 = vmatpush1.msra.mxu0 %v4218_v56  ;;  %3037 = vmatpush3.msra.mxu1 %v4224_v53 }
 0x455   :  { %1792 = vmatprep.subr.mxu0 %v4230_v4  ;;  %3038 = vmatprep.subr.mxu1 %v4726_v8 }
 0x456   :  { %1793 = vmatpush1.msra.mxu0 %v4237_v51  ;;  %3039 = vmatpush3.msra.mxu1 %v4243_v11 }
 0x457   :  { %1794 = vmatprep.subr.mxu0 %v4249_v7  ;;  %3040 = vmatprep.subr.mxu1 %v4726_v8 }
 0x458   :  { %1795 = vmatpush1.msra.mxu0 %v4256_v9  ;;  %3041 = vmatpush3.msra.mxu1 %v4262_v5 }
 0x459   :  { %1796 = vmatprep.subr.mxu0 %v4754_v13  ;;  %3042 = vmatprep.subr.mxu1 %v4726_v8 }
 0x45a   :  { %1797 = vmatpush1.msra.mxu0 %v4755_v63  ;;  %3043 = vmatpush3.msra.mxu1 %v4756_v62 }
 0x45b   :  { %1798 = vmatprep.subr.mxu0 %v4757_v18  ;;  %3044 = vmatprep.subr.mxu1 %v4726_v8 }
 0x45c   :  { %1799 = vmatpush1.msra.mxu0 %v4758_v12  ;;  %3045 = vmatpush3.msra.mxu1 %v4759_v16  ;;  %v1660_v12 = vrot.slane %v1458_v23, 1 }
 0x45d   :  { %1800 = vmatprep.subr.mxu0 %v4760_v17  ;;  %3046 = vmatprep.subr.mxu1 %v4726_v8 }
 0x45e   :  { %1801 = vmatpush1.msra.mxu0 %v4761_v19  ;;  %1834 = vmatprep.mubr.f32.mxu0 %v4726_v8 }
 0x45f   :  { %3047 = vmatpush3.msra.mxu1 %v4762_v1  ;;  %3048 = vmatprep.mubr.msk.f32.mxu1 %vm3334_vm1, %v4726_v8 }
 0x460   :  { %2063 = vmatprep.subr.mxu0 %v4763_v15  ;;  %3051 = vmatprep.subr.mxu1 %v4726_v8 }
 0x4ff   :  { %v1543_v20 = vpop.f32.mrf.mxu0  ;;  %v1614_v24 = vpop.f32.mrf.mxu1 }
 0x500   :  { %v1625_v60 = vrot.slane %v1543_v20, %v3798_v6  ;;  %v1659_v20 = vrot.slane %v1456_v0, 1 }
 0x501   :  { %v1545_v3 = vpop.f32.mrf.mxu0  ;;  %v3015_v21 = vpop.f32.mrf.mxu1 }
 0x502   :  { %v1626_v54 = vcombine.high %v1625_v60, %v1625_v60  ;;  %v1633_v57 = vrot.slane %v1625_v60, %v3798_v6  ;;  %v1670_v10 = vrot.slane %v1545_v3, %v3798_v6 }
 0x504   :  { %v1640_v22 = vrot.slane %v1626_v54, %v3798_v6  ;;  %v1643_v2 = vadd.f32 %v1633_v57, %v1456_v0  ;;  %v1671_v1 = vcombine.high %v1670_v10, %v1670_v10  ;;  %v1678_v17 = vrot.slane %v1670_v10, %v3798_v6 }
 0x506   :  { %v1644_v15 = vadd.f32 %v1640_v22, %v1458_v23  ;;  %v2671_v19 = vmul.f32 -1.442695, %v1643_v2  ;;  %v1685_v21 = vrot.slane %v1671_v1, %v3798_v6  ;;  %v1688_v60 = vadd.f32 %v1678_v17, %v1659_v20 }
 0x508   :  { %3204 = vpow2.f32 %v2671_v19  ;;  %v2672_v16 = vmul.f32 -1.442695, %v1644_v15  ;;  %v1689_v18 = vadd.f32 %v1685_v21, %v1660_v12  ;;  %v2673_v3 = vmul.f32 -1.442695, %v1688_v60  ;;  %v4436_v19 = vld [vmem:[%s4671_s4] ss:$0 sm:$0xff] }
 0x509   :  { %4764 = vst [vmem:[#allocation14_spill] sm:$0xff] %v4436_v19 }
 0x50a   :  { %3206 = vpow2.f32 %v2672_v16  ;;  %v2674_v62 = vmul.f32 -1.442695, %v1689_v18  ;;  %v1702_v16 = vadd.f32 %v4436_v19, %v1614_v24 }
 0x50b   :  { %3208 = vpow2.f32 %v2673_v3  ;;  %v1731_v3 = vrot.slane %v1458_v23, 2 }
 0x50c   :  { %3210 = vpow2.f32 %v2674_v62  ;;  %v1710_v17 = vrot.slane %v1702_v16, %v3798_v6 }
 0x50e   :  { %v1711_v18 = vcombine.high %v1710_v17, %v1710_v17  ;;  %v1718_v62 = vrot.slane %v1710_v17, %v3798_v6 }
 0x510   :  { %v1725_v20 = vrot.slane %v1711_v18, %v3798_v6 }
 0x515   :  { %v3205_v54 = vpop.eup %3204 }
 0x516   :  { %v1651_v57 = vadd.f32 1.0, %v3205_v54 }
 0x517   :  { %v3207_v63 = vpop.eup %3206 }
 0x518   :  { %v1652_v22 = vadd.f32 1.0, %v3207_v63  ;;  %3212 = vrcp.f32 %v1651_v57  ;;  %v3209_v12 = vpop.eup %3208  ;;  %v1730_v63 = vrot.slane %v1456_v0, 2 }
 0x519   :  { %v3211_v1 = vpop.eup %3210  ;;  %v1696_v15 = vadd.f32 1.0, %v3209_v12 }
 0x51a   :  { %3214 = vrcp.f32 %v1652_v22  ;;  %v1697_v10 = vadd.f32 1.0, %v3211_v1 }
 0x51b   :  { %3216 = vrcp.f32 %v1696_v15 }
 0x51c   :  { %3218 = vrcp.f32 %v1697_v10  ;;  %v4766_v10 = vld [vmem:[#allocation6_spill] sm:$0xff] }
 0x525   :  { %v3213_v2 = vpop.eup %3212 }
 0x526   :  { %v1728_v21 = vmul.f32 %v3213_v2, %v1718_v62  ;;  %v4767_v2 = vld [vmem:[#allocation11_spill] sm:$0xff] }
 0x527   :  { %v3215_v60 = vpop.eup %3214 }
 0x528   :  { %v1729_v54 = vmul.f32 %v3215_v60, %v1725_v20  ;;  %v1734_v57 = vadd.f32 %v1730_v63, %v1728_v21  ;;  %v3217_v22 = vpop.eup %3216  ;;  %v4768_v63 = vld [vmem:[#allocation7_spill] sm:$0xff]  ;;  %v4769_v20 = vld [vmem:[#allocation8_spill] sm:$0xff]  ;;  %v4771_v60 = vld [vmem:[#allocation9_spill] sm:$0xff] }
 0x529   :  { %v3219_v16 = vpop.eup %3218  ;;  %v1738_v12 = vsub.f32 1.0, %v3217_v22  ;;  %v1742_v0 = vmul.f32 %v3217_v22, %v4344_v14  ;;  %v4770_v21 = vld [vmem:[#allocation12_spill] sm:$0xff] }
 0x52a   :  { %v1735_v24 = vadd.f32 %v1731_v3, %v1729_v54  ;;  %3220 = vtanh.f32 %v1734_v57  ;;  %v1739_v17 = vsub.f32 1.0, %v3219_v16  ;;  %v1743_v15 = vmul.f32 %v3219_v16, %v4346_v59  ;;  %v4772_v3 = vld [vmem:[#allocation10_spill] sm:$0xff]  ;;  %v4773_v54 = vld [vmem:[#allocation13_spill] sm:$0xff]  ;;  %v4774_v57 = vld [vmem:[#allocation4_spill] sm:$0xff] }
 0x52c   :  { %3222 = vtanh.f32 %v1735_v24 }
 0x537   :  { %v3221_v19 = vpop.eup %3220 }
 0x538   :  { %v1740_v1 = vmul.f32 %v3221_v19, %v1738_v12  ;;  %v4765_v19 = vld [vmem:[#allocation5_spill] sm:$0xff] }
 0x539   :  { %v3223_v13 = vpop.eup %3222 }
 0x53a   :  { %v1741_v18 = vmul.f32 %v3223_v13, %v1739_v17  ;;  %v4444_v62 = vadd.f32 %v1742_v0, %v1740_v1 }
 0x53c   :  { %v4446_v23 = vadd.f32 %v1743_v15, %v1741_v18  ;;  %1746 = vst [vmem:[%s4672_s5 + $0x4] sm:$0x1] %v4444_v62  ;;  %v1749_v15 = vld [vmem:[#allocation2 + $0x5] ss:$8 sm:$0x7] }
 0x53e   :  { %1747 = vst [vmem:[%s4672_s5 + $0xc] sm:$0x1] %v4446_v23  ;;  %v1754_v14 = vcombine.low %v4444_v62, %v4446_v23 }
 0x540   :  { %v1761_v13 = vrot.slane %v1754_v14, %v3798_v6 }
 0x542   :  { %v1768_v59 = vrot.slane %v1761_v13, %v3798_v6 }
 0x544   :  { %1835 = vmatmul.mubr.f32.vlgmr.msra.gmra.mxu0 %v1768_v59  ;;  %3049 = vmatmul.mubr.f32.vlgmr.msra.gmra.mxu1 %v1768_v59  ;;  %v1751_v59 = vld [vmem:[#allocation2 + $0x1d] ss:$8 sm:$0x7] }
 0x545   :  { %2064 = vmatpush1.msra.mxu0 %v4028_v25  ;;  %3052 = vmatpush3.msra.mxu1 %v4034_v26 }
 0x546   :  { %2065 = vmatprep.subr.mxu0 %v4040_v27  ;;  %3053 = vmatprep.subr.mxu1 %v4726_v8 }
 0x547   :  { %2066 = vmatpush1.msra.mxu0 %v4047_v28  ;;  %3054 = vmatpush3.msra.mxu1 %v4053_v29 }
 0x548   :  { %2067 = vmatprep.subr.mxu0 %v4059_v30  ;;  %3055 = vmatprep.subr.mxu1 %v4726_v8 }
 0x549   :  { %2068 = vmatpush1.msra.mxu0 %v4066_v31  ;;  %3056 = vmatpush3.msra.mxu1 %v4072_v32 }
 0x54a   :  { %2069 = vmatprep.subr.mxu0 %v4078_v33  ;;  %3057 = vmatprep.subr.mxu1 %v4726_v8 }
 0x54b   :  { %2070 = vmatpush1.msra.mxu0 %v4085_v34  ;;  %3058 = vmatpush3.msra.mxu1 %v4091_v35 }
 0x54c   :  { %2071 = vmatprep.subr.mxu0 %v4097_v36  ;;  %3059 = vmatprep.subr.mxu1 %v4726_v8 }
 0x54d   :  { %2072 = vmatpush1.msra.mxu0 %v4104_v37  ;;  %3060 = vmatpush3.msra.mxu1 %v4110_v38 }
 0x54e   :  { %2073 = vmatprep.subr.mxu0 %v4116_v39  ;;  %3061 = vmatprep.subr.mxu1 %v4726_v8 }
 0x54f   :  { %2074 = vmatpush1.msra.mxu0 %v4123_v40  ;;  %3062 = vmatpush3.msra.mxu1 %v4129_v41 }
 0x550   :  { %2075 = vmatprep.subr.mxu0 %v4135_v42  ;;  %3063 = vmatprep.subr.mxu1 %v4726_v8 }
 0x551   :  { %2076 = vmatpush1.msra.mxu0 %v4142_v43  ;;  %3064 = vmatpush3.msra.mxu1 %v4148_v44 }
 0x552   :  { %2077 = vmatprep.subr.mxu0 %v4154_v45  ;;  %3065 = vmatprep.subr.mxu1 %v4726_v8 }
 0x553   :  { %2078 = vmatpush1.msra.mxu0 %v4161_v46  ;;  %3066 = vmatpush3.msra.mxu1 %v4167_v47 }
 0x554   :  { %2079 = vmatprep.subr.mxu0 %v4173_v48  ;;  %3067 = vmatprep.subr.mxu1 %v4726_v8 }
 0x555   :  { %2080 = vmatpush1.msra.mxu0 %v4180_v49  ;;  %3068 = vmatpush3.msra.mxu1 %v4186_v50 }
 0x556   :  { %2081 = vmatprep.subr.mxu0 %v4192_v52  ;;  %3069 = vmatprep.subr.mxu1 %v4726_v8 }
 0x557   :  { %2082 = vmatpush1.msra.mxu0 %v4199_v55  ;;  %3070 = vmatpush3.msra.mxu1 %v4205_v58 }
 0x558   :  { %2083 = vmatprep.subr.mxu0 %v4211_v61  ;;  %3071 = vmatprep.subr.mxu1 %v4726_v8 }
 0x559   :  { %2084 = vmatpush1.msra.mxu0 %v4218_v56  ;;  %3072 = vmatpush3.msra.mxu1 %v4224_v53 }
 0x55a   :  { %2085 = vmatprep.subr.mxu0 %v4230_v4  ;;  %3073 = vmatprep.subr.mxu1 %v4726_v8 }
 0x55b   :  { %2086 = vmatpush1.msra.mxu0 %v4237_v51  ;;  %3074 = vmatpush3.msra.mxu1 %v4243_v11 }
 0x55c   :  { %2087 = vmatprep.subr.mxu0 %v4249_v7  ;;  %3075 = vmatprep.subr.mxu1 %v4726_v8 }
 0x55d   :  { %2088 = vmatpush1.msra.mxu0 %v4256_v9  ;;  %3076 = vmatpush3.msra.mxu1 %v4262_v5 }
 0x55e   :  { %2089 = vmatprep.subr.mxu0 %v4765_v19  ;;  %3077 = vmatprep.subr.mxu1 %v4726_v8 }
 0x55f   :  { %2090 = vmatpush1.msra.mxu0 %v4766_v10  ;;  %3078 = vmatpush3.msra.mxu1 %v4767_v2 }
 0x560   :  { %2091 = vmatprep.subr.mxu0 %v4768_v63  ;;  %3079 = vmatprep.subr.mxu1 %v4726_v8 }
 0x561   :  { %2092 = vmatpush1.msra.mxu0 %v4769_v20  ;;  %3080 = vmatpush3.msra.mxu1 %v4770_v21  ;;  %v1953_v20 = vrot.slane %v1751_v59, 1 }
 0x562   :  { %2093 = vmatprep.subr.mxu0 %v4771_v60  ;;  %3081 = vmatprep.subr.mxu1 %v4726_v8 }
 0x563   :  { %2094 = vmatpush1.msra.mxu0 %v4772_v3  ;;  %2127 = vmatprep.mubr.f32.mxu0 %v4726_v8 }
 0x564   :  { %3082 = vmatpush3.msra.mxu1 %v4773_v54  ;;  %3083 = vmatprep.mubr.msk.f32.mxu1 %vm3334_vm1, %v4726_v8 }
 0x565   :  { %2356 = vmatprep.subr.mxu0 %v4774_v57  ;;  %3086 = vmatprep.subr.mxu1 %v4726_v8 }
 0x604   :  { %v1836_v24 = vpop.f32.mrf.mxu0  ;;  %v1907_v22 = vpop.f32.mrf.mxu1 }
 0x605   :  { %v1918_v16 = vrot.slane %v1836_v24, %v3798_v6  ;;  %v1952_v24 = vrot.slane %v1749_v15, 1 }
 0x606   :  { %v1838_v12 = vpop.f32.mrf.mxu0  ;;  %v3050_v17 = vpop.f32.mrf.mxu1 }
 0x607   :  { %v1919_v1 = vcombine.high %v1918_v16, %v1918_v16  ;;  %v1926_v0 = vrot.slane %v1918_v16, %v3798_v6  ;;  %v1963_v18 = vrot.slane %v1838_v12, %v3798_v6 }
 0x609   :  { %v1933_v14 = vrot.slane %v1919_v1, %v3798_v6  ;;  %v1936_v13 = vadd.f32 %v1926_v0, %v1749_v15  ;;  %v1964_v54 = vcombine.high %v1963_v18, %v1963_v18  ;;  %v1971_v60 = vrot.slane %v1963_v18, %v3798_v6  ;;  %v4775_v18 = vld [vmem:[#allocation14_spill] sm:$0xff] }
 0x60b   :  { %v1937_v57 = vadd.f32 %v1933_v14, %v1751_v59  ;;  %v2675_v3 = vmul.f32 -1.442695, %v1936_v13  ;;  %v1978_v17 = vrot.slane %v1964_v54, %v3798_v6  ;;  %v1981_v16 = vadd.f32 %v1971_v60, %v1952_v24 }
 0x60c   :  { %v2023_v24 = vrot.slane %v1749_v15, 2 }
 0x60d   :  { %3224 = vpow2.f32 %v2675_v3  ;;  %v2676_v21 = vmul.f32 -1.442695, %v1937_v57  ;;  %v1982_v63 = vadd.f32 %v1978_v17, %v1953_v20  ;;  %v2677_v12 = vmul.f32 -1.442695, %v1981_v16 }
 0x60e   :  { %v1995_v3 = vadd.f32 %v4775_v18, %v1907_v22  ;;  %v2024_v16 = vrot.slane %v1751_v59, 2 }
 0x60f   :  { %3226 = vpow2.f32 %v2676_v21  ;;  %v2678_v2 = vmul.f32 -1.442695, %v1982_v63 }
 0x610   :  { %3228 = vpow2.f32 %v2677_v12  ;;  %v2003_v13 = vrot.slane %v1995_v3, %v3798_v6 }
 0x611   :  { %3230 = vpow2.f32 %v2678_v2 }
 0x612   :  { %v2004_v21 = vcombine.high %v2003_v13, %v2003_v13  ;;  %v2011_v20 = vrot.slane %v2003_v13, %v3798_v6 }
 0x614   :  { %v2018_v2 = vrot.slane %v2004_v21, %v3798_v6 }
 0x61a   :  { %v3225_v1 = vpop.eup %3224 }
 0x61b   :  { %v1944_v0 = vadd.f32 1.0, %v3225_v1 }
 0x61c   :  { %v3227_v10 = vpop.eup %3226 }
 0x61d   :  { %v1945_v14 = vadd.f32 1.0, %v3227_v10  ;;  %3232 = vrcp.f32 %v1944_v0  ;;  %v3229_v57 = vpop.eup %3228 }
 0x61e   :  { %v3231_v54 = vpop.eup %3230  ;;  %v1989_v19 = vadd.f32 1.0, %v3229_v57 }
 0x61f   :  { %3234 = vrcp.f32 %v1945_v14  ;;  %v1990_v60 = vadd.f32 1.0, %v3231_v54 }
 0x620   :  { %3236 = vrcp.f32 %v1989_v19 }
 0x621   :  { %3238 = vrcp.f32 %v1990_v60 }
 0x62a   :  { %v3233_v63 = vpop.eup %3232 }
 0x62b   :  { %v2021_v17 = vmul.f32 %v3233_v63, %v2011_v20 }
 0x62c   :  { %v3235_v10 = vpop.eup %3234 }
 0x62d   :  { %v2022_v12 = vmul.f32 %v3235_v10, %v2018_v2  ;;  %v2027_v1 = vadd.f32 %v2023_v24, %v2021_v17  ;;  %v3237_v0 = vpop.eup %3236 }
 0x62e   :  { %v3239_v14 = vpop.eup %3238  ;;  %v2031_v3 = vsub.f32 1.0, %v3237_v0  ;;  %v2035_v15 = vmul.f32 %v3237_v0, %v4444_v62 }
 0x62f   :  { %v2028_v22 = vadd.f32 %v2024_v16, %v2022_v12  ;;  %3240 = vtanh.f32 %v2027_v1  ;;  %v2032_v13 = vsub.f32 1.0, %v3239_v14  ;;  %v2036_v19 = vmul.f32 %v3239_v14, %v4446_v23 }
 0x631   :  { %3242 = vtanh.f32 %v2028_v22 }
 0x63c   :  { %v3241_v57 = vpop.eup %3240 }
 0x63d   :  { %v2033_v54 = vmul.f32 %v3241_v57, %v2031_v3 }
 0x63e   :  { %v3243_v18 = vpop.eup %3242 }
 0x63f   :  { %v2034_v21 = vmul.f32 %v3243_v18, %v2032_v13  ;;  %v4539_v20 = vadd.f32 %v2035_v15, %v2033_v54 }
 0x641   :  { %v4541_v59 = vadd.f32 %v2036_v19, %v2034_v21  ;;  %2039 = vst [vmem:[%s4672_s5 + $0x5] sm:$0x1] %v4539_v20 }
 0x643   :  { %2040 = vst [vmem:[%s4672_s5 + $0xd] sm:$0x1] %v4541_v59  ;;  %v2047_v62 = vcombine.low %v4539_v20, %v4541_v59 }
 0x645   :  { %v2054_v18 = vrot.slane %v2047_v62, %v3798_v6 }
 0x647   :  { %v2061_v23 = vrot.slane %v2054_v18, %v3798_v6 }
 0x649   :  { %2128 = vmatmul.mubr.f32.vlgmr.msra.gmra.mxu0 %v2061_v23  ;;  %3084 = vmatmul.mubr.f32.vlgmr.msra.gmra.mxu1 %v2061_v23 }
 0x64a   :  { %2357 = vmatpush1.msra.mxu0 %v4028_v25  ;;  %3087 = vmatpush3.msra.mxu1 %v4034_v26  ;;  %v4776_v25 = vld [vmem:[#allocation5_spill] sm:$0xff]  ;;  %v4777_v26 = vld [vmem:[#allocation6_spill] sm:$0xff] }
 0x64b   :  { %2358 = vmatprep.subr.mxu0 %v4040_v27  ;;  %3088 = vmatprep.subr.mxu1 %v4726_v8  ;;  %v4778_v27 = vld [vmem:[#allocation11_spill] sm:$0xff] }
 0x64c   :  { %2359 = vmatpush1.msra.mxu0 %v4047_v28  ;;  %3089 = vmatpush3.msra.mxu1 %v4053_v29  ;;  %v4779_v28 = vld [vmem:[#allocation7_spill] sm:$0xff]  ;;  %v4780_v29 = vld [vmem:[#allocation8_spill] sm:$0xff] }
 0x64d   :  { %2360 = vmatprep.subr.mxu0 %v4059_v30  ;;  %3090 = vmatprep.subr.mxu1 %v4726_v8  ;;  %v4781_v30 = vld [vmem:[#allocation12_spill] sm:$0xff] }
 0x64e   :  { %2361 = vmatpush1.msra.mxu0 %v4066_v31  ;;  %3091 = vmatpush3.msra.mxu1 %v4072_v32  ;;  %v4782_v31 = vld [vmem:[#allocation9_spill] sm:$0xff]  ;;  %v4783_v32 = vld [vmem:[#allocation10_spill] sm:$0xff] }
 0x64f   :  { %2362 = vmatprep.subr.mxu0 %v4078_v33  ;;  %3092 = vmatprep.subr.mxu1 %v4726_v8  ;;  %v4784_v33 = vld [vmem:[#allocation13_spill] sm:$0xff] }
 0x650   :  { %2363 = vmatpush1.msra.mxu0 %v4085_v34  ;;  %3093 = vmatpush3.msra.mxu1 %v4091_v35 }
 0x651   :  { %2364 = vmatprep.subr.mxu0 %v4097_v36  ;;  %3094 = vmatprep.subr.mxu1 %v4726_v8 }
 0x652   :  { %2365 = vmatpush1.msra.mxu0 %v4104_v37  ;;  %3095 = vmatpush3.msra.mxu1 %v4110_v38 }
 0x653   :  { %2366 = vmatprep.subr.mxu0 %v4116_v39  ;;  %3096 = vmatprep.subr.mxu1 %v4726_v8 }
 0x654   :  { %2367 = vmatpush1.msra.mxu0 %v4123_v40  ;;  %3097 = vmatpush3.msra.mxu1 %v4129_v41 }
 0x655   :  { %2368 = vmatprep.subr.mxu0 %v4135_v42  ;;  %3098 = vmatprep.subr.mxu1 %v4726_v8  ;;  %v2042_v42 = vld [vmem:[#allocation2 + $0x6] ss:$8 sm:$0x7] }
 0x656   :  { %2369 = vmatpush1.msra.mxu0 %v4142_v43  ;;  %3099 = vmatpush3.msra.mxu1 %v4148_v44  ;;  %v2316_v1 = vrot.slane %v2042_v42, 2 }
 0x657   :  { %2370 = vmatprep.subr.mxu0 %v4154_v45  ;;  %3100 = vmatprep.subr.mxu1 %v4726_v8  ;;  %v2044_v45 = vld [vmem:[#allocation2 + $0x1e] ss:$8 sm:$0x7] }
 0x658   :  { %2371 = vmatpush1.msra.mxu0 %v4161_v46  ;;  %3101 = vmatpush3.msra.mxu1 %v4167_v47  ;;  %v2317_v3 = vrot.slane %v2044_v45, 2 }
 0x659   :  { %2372 = vmatprep.subr.mxu0 %v4173_v48  ;;  %3102 = vmatprep.subr.mxu1 %v4726_v8 }
 0x65a   :  { %2373 = vmatpush1.msra.mxu0 %v4180_v49  ;;  %3103 = vmatpush3.msra.mxu1 %v4186_v50  ;;  %v2245_v50 = vrot.slane %v2042_v42, 1 }
 0x65b   :  { %2374 = vmatprep.subr.mxu0 %v4192_v52  ;;  %3104 = vmatprep.subr.mxu1 %v4726_v8 }
 0x65c   :  { %2375 = vmatpush1.msra.mxu0 %v4199_v55  ;;  %3105 = vmatpush3.msra.mxu1 %v4205_v58  ;;  %v2246_v55 = vrot.slane %v2044_v45, 1 }
 0x65d   :  { %2376 = vmatprep.subr.mxu0 %v4211_v61  ;;  %3106 = vmatprep.subr.mxu1 %v4726_v8 }
 0x65e   :  { %2377 = vmatpush1.msra.mxu0 %v4218_v56  ;;  %3107 = vmatpush3.msra.mxu1 %v4224_v53 }
 0x65f   :  { %2378 = vmatprep.subr.mxu0 %v4230_v4  ;;  %3108 = vmatprep.subr.mxu1 %v4726_v8 }
 0x660   :  { %2379 = vmatpush1.msra.mxu0 %v4237_v51  ;;  %3109 = vmatpush3.msra.mxu1 %v4243_v11 }
 0x661   :  { %2380 = vmatprep.subr.mxu0 %v4249_v7  ;;  %3110 = vmatprep.subr.mxu1 %v4726_v8 }
 0x662   :  { %2381 = vmatpush1.msra.mxu0 %v4256_v9  ;;  %3111 = vmatpush3.msra.mxu1 %v4262_v5  ;;  %v4785_v9 = vld [vmem:[#allocation14_spill] sm:$0xff] }
 0x663   :  { %2382 = vmatprep.subr.mxu0 %v4776_v25  ;;  %3112 = vmatprep.subr.mxu1 %v4726_v8 }
 0x664   :  { %2383 = vmatpush1.msra.mxu0 %v4777_v26  ;;  %3113 = vmatpush3.msra.mxu1 %v4778_v27 }
 0x665   :  { %2384 = vmatprep.subr.mxu0 %v4779_v28  ;;  %3114 = vmatprep.subr.mxu1 %v4726_v8 }
 0x666   :  { %2385 = vmatpush1.msra.mxu0 %v4780_v29  ;;  %3115 = vmatpush3.msra.mxu1 %v4781_v30 }
 0x667   :  { %2386 = vmatprep.subr.mxu0 %v4782_v31  ;;  %3116 = vmatprep.subr.mxu1 %v4726_v8 }
 0x668   :  { %2387 = vmatpush1.msra.mxu0 %v4783_v32  ;;  %2420 = vmatprep.mubr.f32.mxu0 %v4726_v8 }
 0x669   :  { %3117 = vmatpush3.msra.mxu1 %v4784_v33  ;;  %3118 = vmatprep.mubr.msk.f32.mxu1 %vm3334_vm1, %v4726_v8 }
 0x709   :  { %v2129_v34 = vpop.f32.mrf.mxu0  ;;  %v2200_v35 = vpop.f32.mrf.mxu1 }
 0x70a   :  { %v2211_v36 = vrot.slane %v2129_v34, %v3798_v6  ;;  %v2288_v5 = vadd.f32 %v4785_v9, %v2200_v35 }
 0x70b   :  { %v2131_v37 = vpop.f32.mrf.mxu0  ;;  %v3085_v38 = vpop.f32.mrf.mxu1 }
 0x70c   :  { %v2212_v39 = vcombine.high %v2211_v36, %v2211_v36  ;;  %v2219_v40 = vrot.slane %v2211_v36, %v3798_v6  ;;  %v2256_v41 = vrot.slane %v2131_v37, %v3798_v6  ;;  %v2296_v60 = vrot.slane %v2288_v5, %v3798_v6 }
 0x70e   :  { %v2226_v43 = vrot.slane %v2212_v39, %v3798_v6  ;;  %v2229_v44 = vadd.f32 %v2219_v40, %v2042_v42  ;;  %v2257_v46 = vcombine.high %v2256_v41, %v2256_v41  ;;  %v2264_v8 = vrot.slane %v2256_v41, %v3798_v6  ;;  %v2335_v40 = vld [vmem:[#allocation2 + $0x7] ss:$8 sm:$0x7] }
 0x70f   :  { %v2297_v2 = vcombine.high %v2296_v60, %v2296_v60  ;;  %v2304_v10 = vrot.slane %v2296_v60, %v3798_v6 }
 0x710   :  { %v2230_v47 = vadd.f32 %v2226_v43, %v2044_v45  ;;  %v2679_v48 = vmul.f32 -1.442695, %v2229_v44  ;;  %v2271_v52 = vrot.slane %v2257_v46, %v3798_v6  ;;  %v2274_v58 = vadd.f32 %v2264_v8, %v2245_v50  ;;  %v2337_v43 = vld [vmem:[#allocation2 + $0x1f] ss:$8 sm:$0x7] }
 0x711   :  { %v2311_v22 = vrot.slane %v2297_v2, %v3798_v6  ;;  %v2538_v8 = vrot.slane %v2335_v40, 1  ;;  %v2539_v50 = vrot.slane %v2337_v43, 1 }
 0x712   :  { %3244 = vpow2.f32 %v2679_v48  ;;  %v2680_v49 = vmul.f32 -1.442695, %v2230_v47  ;;  %v2275_v61 = vadd.f32 %v2271_v52, %v2246_v55  ;;  %v2681_v56 = vmul.f32 -1.442695, %v2274_v58 }
 0x714   :  { %3246 = vpow2.f32 %v2680_v49  ;;  %v2682_v53 = vmul.f32 -1.442695, %v2275_v61 }
 0x715   :  { %3248 = vpow2.f32 %v2681_v56 }
 0x716   :  { %3250 = vpow2.f32 %v2682_v53 }
 0x71f   :  { %v3245_v4 = vpop.eup %3244 }
 0x720   :  { %v2237_v51 = vadd.f32 1.0, %v3245_v4 }
 0x721   :  { %v3247_v11 = vpop.eup %3246 }
 0x722   :  { %v2238_v7 = vadd.f32 1.0, %v3247_v11  ;;  %3252 = vrcp.f32 %v2237_v51  ;;  %v3249_v63 = vpop.eup %3248 }
 0x723   :  { %v3251_v24 = vpop.eup %3250  ;;  %v2282_v17 = vadd.f32 1.0, %v3249_v63 }
 0x724   :  { %3254 = vrcp.f32 %v2238_v7  ;;  %v2283_v16 = vadd.f32 1.0, %v3251_v24 }
 0x725   :  { %3256 = vrcp.f32 %v2282_v17 }
 0x726   :  { %3258 = vrcp.f32 %v2283_v16  ;;  %v2609_v16 = vrot.slane %v2335_v40, 2 }
 0x72f   :  { %v3253_v12 = vpop.eup %3252 }
 0x730   :  { %v2314_v0 = vmul.f32 %v3253_v12, %v2304_v10 }
 0x731   :  { %v3255_v14 = vpop.eup %3254 }
 0x732   :  { %v2315_v57 = vmul.f32 %v3255_v14, %v2311_v22  ;;  %v2320_v13 = vadd.f32 %v2316_v1, %v2314_v0  ;;  %v3257_v15 = vpop.eup %3256  ;;  %v2610_v0 = vrot.slane %v2337_v43, 2 }
 0x733   :  { %v3259_v21 = vpop.eup %3258  ;;  %v2324_v19 = vsub.f32 1.0, %v3257_v15  ;;  %v2328_v25 = vmul.f32 %v3257_v15, %v4539_v20 }
 0x734   :  { %v2321_v54 = vadd.f32 %v2317_v3, %v2315_v57  ;;  %3260 = vtanh.f32 %v2320_v13  ;;  %v2325_v18 = vsub.f32 1.0, %v3259_v21  ;;  %v2329_v28 = vmul.f32 %v3259_v21, %v4541_v59 }
 0x736   :  { %3262 = vtanh.f32 %v2321_v54 }
 0x741   :  { %v3261_v62 = vpop.eup %3260 }
 0x742   :  { %v2326_v23 = vmul.f32 %v3261_v62, %v2324_v19 }
 0x743   :  { %v3263_v26 = vpop.eup %3262 }
 0x744   :  { %v2327_v27 = vmul.f32 %v3263_v26, %v2325_v18  ;;  %v4632_v29 = vadd.f32 %v2328_v25, %v2326_v23 }
 0x746   :  { %v4634_v30 = vadd.f32 %v2329_v28, %v2327_v27  ;;  %2332 = vst [vmem:[%s4672_s5 + $0x6] sm:$0x1] %v4632_v29 }
 0x748   :  { %2333 = vst [vmem:[%s4672_s5 + $0xe] sm:$0x1] %v4634_v30  ;;  %v2340_v20 = vcombine.low %v4632_v29, %v4634_v30 }
 0x74a   :  { %v2347_v31 = vrot.slane %v2340_v20, %v3798_v6 }
 0x74c   :  { %v2354_v59 = vrot.slane %v2347_v31, %v3798_v6 }
 0x74e   :  { %2421 = vmatmul.mubr.f32.vlgmr.msra.gmra.mxu0 %v2354_v59  ;;  %3119 = vmatmul.mubr.f32.vlgmr.msra.gmra.mxu1 %v2354_v59 }
 0x80e   :  { %v2422_v32 = vpop.f32.mrf.mxu0  ;;  %v2493_v33 = vpop.f32.mrf.mxu1 }
 0x80f   :  { %v2504_v34 = vrot.slane %v2422_v32, %v3798_v6  ;;  %v2581_v11 = vadd.f32 %v4785_v9, %v2493_v33 }
 0x810   :  { %v2424_v35 = vpop.f32.mrf.mxu0  ;;  %v3120_v36 = vpop.f32.mrf.mxu1 }
 0x811   :  { %v2505_v37 = vcombine.high %v2504_v34, %v2504_v34  ;;  %v2512_v38 = vrot.slane %v2504_v34, %v3798_v6  ;;  %v2549_v39 = vrot.slane %v2424_v35, %v3798_v6  ;;  %v2589_v7 = vrot.slane %v2581_v11, %v3798_v6 }
 0x813   :  { %v2519_v41 = vrot.slane %v2505_v37, %v3798_v6  ;;  %v2522_v42 = vadd.f32 %v2512_v38, %v2335_v40  ;;  %v2550_v44 = vcombine.high %v2549_v39, %v2549_v39  ;;  %v2557_v47 = vrot.slane %v2549_v39, %v3798_v6 }
 0x814   :  { %v2590_v63 = vcombine.high %v2589_v7, %v2589_v7  ;;  %v2597_v2 = vrot.slane %v2589_v7, %v3798_v6 }
 0x815   :  { %v2523_v45 = vadd.f32 %v2519_v41, %v2337_v43  ;;  %v2683_v46 = vmul.f32 -1.442695, %v2522_v42  ;;  %v2564_v49 = vrot.slane %v2550_v44, %v3798_v6  ;;  %v2567_v52 = vadd.f32 %v2557_v47, %v2538_v8 }
 0x816   :  { %v2604_v12 = vrot.slane %v2590_v63, %v3798_v6 }
 0x817   :  { %3264 = vpow2.f32 %v2683_v46  ;;  %v2684_v48 = vmul.f32 -1.442695, %v2523_v45  ;;  %v2568_v55 = vadd.f32 %v2564_v49, %v2539_v50  ;;  %v2685_v58 = vmul.f32 -1.442695, %v2567_v52 }
 0x819   :  { %3266 = vpow2.f32 %v2684_v48  ;;  %v2686_v61 = vmul.f32 -1.442695, %v2568_v55 }
 0x81a   :  { %3268 = vpow2.f32 %v2685_v58 }
 0x81b   :  { %3270 = vpow2.f32 %v2686_v61 }
 0x824   :  { %v3265_v56 = vpop.eup %3264 }
 0x825   :  { %v2530_v53 = vadd.f32 1.0, %v3265_v56 }
 0x826   :  { %v3267_v4 = vpop.eup %3266 }
 0x827   :  { %v2531_v51 = vadd.f32 1.0, %v3267_v4  ;;  %3272 = vrcp.f32 %v2530_v53  ;;  %v3269_v5 = vpop.eup %3268 }
 0x828   :  { %v3271_v60 = vpop.eup %3270  ;;  %v2575_v24 = vadd.f32 1.0, %v3269_v5 }
 0x829   :  { %3274 = vrcp.f32 %v2531_v51  ;;  %v2576_v17 = vadd.f32 1.0, %v3271_v60 }
 0x82a   :  { %3276 = vrcp.f32 %v2575_v24 }
 0x82b   :  { %3278 = vrcp.f32 %v2576_v17 }
 0x834   :  { %v3273_v10 = vpop.eup %3272 }
 0x835   :  { %v2607_v1 = vmul.f32 %v3273_v10, %v2597_v2 }
 0x836   :  { %v3275_v22 = vpop.eup %3274 }
 0x837   :  { %v2608_v14 = vmul.f32 %v3275_v22, %v2604_v12  ;;  %v2613_v3 = vadd.f32 %v2609_v16, %v2607_v1  ;;  %v3277_v57 = vpop.eup %3276 }
 0x838   :  { %v3279_v13 = vpop.eup %3278  ;;  %v2617_v54 = vsub.f32 1.0, %v3277_v57  ;;  %v2621_v62 = vmul.f32 %v3277_v57, %v4632_v29 }
 0x839   :  { %v2614_v9 = vadd.f32 %v2610_v0, %v2608_v14  ;;  %3280 = vtanh.f32 %v2613_v3  ;;  %v2618_v21 = vsub.f32 1.0, %v3279_v13  ;;  %v2622_v25 = vmul.f32 %v3279_v13, %v4634_v30 }
 0x83b   :  { %3282 = vtanh.f32 %v2614_v9 }
 0x846   :  { %v3281_v15 = vpop.eup %3280 }
 0x847   :  { %v2619_v19 = vmul.f32 %v3281_v15, %v2617_v54 }
 0x848   :  { %v3283_v18 = vpop.eup %3282 }
 0x849   :  { %v2620_v23 = vmul.f32 %v3283_v18, %v2618_v21  ;;  %v2623_v26 = vadd.f32 %v2621_v62, %v2619_v19 }
 0x84b   :  { %v2624_v27 = vadd.f32 %v2622_v25, %v2620_v23  ;;  %2625 = vst [vmem:[%s4672_s5 + $0x7] sm:$0x1] %v2623_v26 }
 0x84d   :  { %2626 = vst [vmem:[%s4672_s5 + $0xf] sm:$0x1] %v2624_v27  ;;  %v2629_v28 = vcombine.low %v2623_v26, %v2624_v27 }
 0x84f   :  { %v2636_v20 = vrot.slane %v2629_v28, %v3798_v6 }
 0x851   :  { %2687 = vst.sshfl [vmem:[#allocation3] sm:$0x5 pattern:$0x73625140] %v2636_v20 }

</bundles_post_ra>
